<compile_context>
chip_gen: v5e
topology: v5e:2x2
jax: 0.10.0
libtpu: 0.0.40
codegen_flags: <defaults>
</compile_context>

<pallas_src>
import math

import jax
import jax.numpy as jnp
from jax.experimental import pallas as pl
from jax.experimental.pallas import tpu as pltpu

# ---------------- module configuration (mirrors TiledMemristorLinear.__init__) --------
IN_FEATURES = 24
OUT_FEATURES = 20
WEIGHT_PRECISION = 3                    # -> (weight_precision - 1) bit levels
MEM_IN = 16                             # memristor_inputs  (I per tile)
MEM_OUT = 8                             # memristor_outputs (O per tile)
BATCH = 4

INPUT_TILING = -(-IN_FEATURES // MEM_IN)       # 2
OUTPUT_TILING = -(-OUT_FEATURES // MEM_OUT)    # 3
NUM_LEVELS = WEIGHT_PRECISION - 1              # 2
NUM_MEM = NUM_LEVELS * INPUT_TILING * OUTPUT_TILING   # 12 PairedMemristorArrayV2
NUM_SLOTS = NUM_LEVELS * OUTPUT_TILING * 2     # 12 sublane-packed (pos/neg) array slots
IO = MEM_IN * MEM_OUT                          # 128 -> one full lane axis
B_PAD = 8                                      # sublanes: [tile0 x 4 batch, tile1 x 4 batch]
OUT_LANES = 128                                # lane-dense (padded) output width

assert IO == 128
assert INPUT_TILING * BATCH == B_PAD, "sublane packing assumes two tiles x 4 batch rows"

LOW_DEG = 7                              # MemristorArray low_degree
HIGH_DEG = 6                             # MemristorArray high_degree
PMAX = max(LOW_DEG, HIGH_DEG)            # 7 polynomial coefficients (degrees 0..6)

# DacAdcHardwareSettings
INPUT_BITS = 8
OUTPUT_PRECISION_BITS = 8
OUTPUT_RANGE_BITS = 4
HW_INPUT_VMAX = 0.6
HW_OUTPUT_CURRENT_SCALING = 4.0

DAC_SCALE = 1.0 / 2 ** (INPUT_BITS - 1)
DAC_MAX = float(2 ** (INPUT_BITS - 1))
DAC_MIN = -DAC_MAX
ADC_SCALE = 1.0 / 2 ** OUTPUT_PRECISION_BITS
ADC_MAX = float(2 ** (OUTPUT_PRECISION_BITS + OUTPUT_RANGE_BITS - 1))
ADC_MIN = -ADC_MAX
ADC_GAIN = HW_OUTPUT_CURRENT_SCALING / ADC_SCALE   # folded into the reduce matrices

# MemristorArray physical constants
BW = 1e-8
KBT = 1.380649e-23 * 300.0
NOISE_MIN_V = 1e-12
E_CONST = math.e
JOHNSON_C = 4.0 * KBT * BW
SHOT_C = 2.0 * E_CONST * BW

INPUT_FACTOR = 0.8
OUTPUT_FACTOR = 0.05

LEVEL_W = [2.0 ** (WEIGHT_PRECISION - 1 - i - 1) for i in range(NUM_LEVELS)]  # [2.0, 1.0]


def mem_index(i, j, k):
    # == TiledMemristorLinear.get_memristor_index
    return (i * INPUT_TILING + j) * OUTPUT_TILING + k


def _fake_quant(x, scale, qmin, qmax):
    # torch.fake_quantize_per_tensor_affine with zero_point=0 (round-half-to-even)
    return jnp.clip(jnp.round(x / scale), qmin, qmax) * scale


# ------------------------------- Pallas kernel ----------------------------------------
def memristor_kernel(x_ref, w_ref, nz_ref, rmat_ref, bias_ref, out_ref):
    # x_ref:    [B_PAD, IO]        raw inputs; sublanes 0..3 = batch rows (input tile 0),
    #                              sublanes 4..7 = same rows (input tile 1); lane i*8+o
    #                              carries input line i repeated over its 8 output lanes.
    # w_ref:    [NUM_SLOTS, PMAX, B_PAD, IO]  fused per-power weights
    #                              w = c_low*(1-r) + c_high*r, j packed on sublane halves,
    #                              pre-broadcast over the 4 batch rows.
    # nz_ref:   [NUM_SLOTS, B_PAD, IO]  gaussian noise draws, packed the same way.
    # rmat_ref: [OUTPUT_TILING, IO, OUT_LANES]  input-line reduce matrices with the ADC
    #                              gain folded in; columns placed at lane offset k*8.
    # bias_ref: [B_PAD, OUT_LANES] bias on lanes [0, OUT_FEATURES), zero elsewhere.
    # out_ref:  [B_PAD, OUT_LANES] lanes [0, OUT_FEATURES) of sublanes [0, BATCH) valid.

    # DAC (input fake-quant); input_factor folded into the quantization constant.
    x = x_ref[...]
    v = jnp.clip(jnp.round(x * (INPUT_FACTOR / DAC_SCALE)), DAC_MIN, DAC_MAX) * (
        DAC_SCALE * HW_INPUT_VMAX)

    # Noise factor shared by every array: sigma^2 = |raw| * (4kBT BW/(|v|+eps) + 2 e BW).
    nf = JOHNSON_C * pl.reciprocal(jnp.abs(v) + NOISE_MIN_V, approx=True) + SHOT_C

    # Powers v^1 .. v^(PMAX-1), shared by every array and both input tiles.
    vpow = [v]
    for _ in range(PMAX - 2):
        vpow.append(vpow[-1] * v)

    def noised_response(slot):
        # raw(v) = sum_p v^p * w[slot, p]   (== poly_low(v)*(1-r) + poly_high(v)*r)
        raw = w_ref[slot, 0]                               # constant term, full [8,128] tile
        for p in range(1, PMAX):
            raw = raw + vpow[p - 1] * w_ref[slot, p]
        sigma = jnp.sqrt(jnp.abs(raw) * nf)
        return raw + nz_ref[slot] * sigma

    out_acc = bias_ref[...]                                # bias-initialized accumulator
    for i in range(NUM_LEVELS):
        scale_i = ADC_SCALE * LEVEL_W[i] * OUTPUT_FACTOR   # ADC value + bit weight + output_factor
        for k in range(OUTPUT_TILING):
            g = i * OUTPUT_TILING + k
            # Paired (pos - neg) noised response, both input tiles on sublane halves.
            diff = noised_response(2 * g) - noised_response(2 * g + 1)        # [B_PAD, IO]
            # Reduce the 16 input lines onto 8 output lanes at offset k*8 (MXU),
            # issued immediately so it overlaps with the next group's VPU/EUP work.
            pre_adc = jnp.dot(diff, rmat_ref[k], preferred_element_type=jnp.float32)
            # ADC integer codes (fake-quant round + clip, per input tile).
            q = jnp.clip(jnp.round(pre_adc), ADC_MIN, ADC_MAX)
            # Post-ADC sum over the two input tiles: tile 1 lives on sublanes 4..7.
            qsum = q + pltpu.roll(q, shift=BATCH, axis=0)
            out_acc = out_acc + qsum * scale_i
    out_ref[...] = out_acc                                 # single unmasked 128-lane store


# ------------------------------- parameter packing -------------------------------------
def pack_params(r_all, low_coeffs, high_coeffs, noise_all, bias):
    """One-time packing of module state into kernel-friendly, lane/sublane-aligned arrays.

    r_all:       [NUM_MEM, 2, MEM_IN, MEM_OUT]   (pos/neg resistance state)
    low_coeffs:  [NUM_MEM, 2, LOW_DEG]
    high_coeffs: [NUM_MEM, 2, HIGH_DEG]
    noise_all:   [NUM_MEM, 2, MEM_IN, MEM_OUT]   (one broadcast draw per array)
    bias:        [OUT_FEATURES]
    """
    # Fused per-power weights per physical array: w[m,pn,p,io] = c_low*(1-r) + c_high*r
    r = r_all.reshape(NUM_MEM, 2, 1, IO).astype(jnp.float32)
    cl = jnp.pad(low_coeffs, ((0, 0), (0, 0), (0, PMAX - LOW_DEG))).astype(jnp.float32)
    ch = jnp.pad(high_coeffs, ((0, 0), (0, 0), (0, PMAX - HIGH_DEG))).astype(jnp.float32)
    w_arr = cl[..., None] * (1.0 - r) + ch[..., None] * r          # [NUM_MEM, 2, PMAX, IO]
    nz_arr = noise_all.reshape(NUM_MEM, 2, IO).astype(jnp.float32)  # [NUM_MEM, 2, IO]

    # Slot s = (i*OUTPUT_TILING + k)*2 + pn.  Sublanes 0..3 <- array (i, j=0, k),
    # sublanes 4..7 <- array (i, j=1, k); each pre-broadcast over its 4 batch rows.
    slots_w, slots_nz = [], []
    for i in range(NUM_LEVELS):
        for k in range(OUTPUT_TILING):
            for pn in range(2):
                m0 = mem_index(i, 0, k)
                m1 = mem_index(i, 1, k)
                w0 = jnp.broadcast_to(w_arr[m0, pn][:, None, :], (PMAX, BATCH, IO))
                w1 = jnp.broadcast_to(w_arr[m1, pn][:, None, :], (PMAX, B_PAD - BATCH, IO))
                slots_w.append(jnp.concatenate([w0, w1], axis=1))
                n0 = jnp.broadcast_to(nz_arr[m0, pn][None, :], (BATCH, IO))
                n1 = jnp.broadcast_to(nz_arr[m1, pn][None, :], (B_PAD - BATCH, IO))
                slots_nz.append(jnp.concatenate([n0, n1], axis=0))
    w_packed = jnp.stack(slots_w).astype(jnp.float32)      # [NUM_SLOTS, PMAX, B_PAD, IO]
    nz_packed = jnp.stack(slots_nz).astype(jnp.float32)    # [NUM_SLOTS, B_PAD, IO]

    # Per-output-tile reduce matrices: lane i*8+o -> column k*8+o, scaled by the ADC gain.
    base = jnp.tile(jnp.eye(MEM_OUT, dtype=jnp.float32), (MEM_IN, 1)) * ADC_GAIN  # [IO, 8]
    rmats = []
    for k in range(OUTPUT_TILING):
        m = jnp.zeros((IO, OUT_LANES), jnp.float32)
        m = m.at[:, k * MEM_OUT:(k + 1) * MEM_OUT].set(base)
        rmats.append(m)
    rmat = jnp.stack(rmats)                                 # [OUTPUT_TILING, IO, OUT_LANES]

    # Lane-dense bias slab (lanes >= OUT_FEATURES are zero; those lanes are sliced off).
    bias_lane = jnp.zeros((OUT_LANES,), jnp.float32).at[:OUT_FEATURES].set(
        bias.astype(jnp.float32))
    bias_packed = jnp.tile(bias_lane[None, :], (B_PAD, 1))  # [B_PAD, OUT_LANES]

    return w_packed, nz_packed, rmat, bias_packed


# ------------------------------- forward wrapper ----------------------------------------
@jax.jit
def tiled_memristor_linear(x, w_packed, nz_packed, rmat, bias_packed):
    b = x.shape[0]
    assert b <= BATCH
    # Layout plumbing only (no arithmetic): pad, split into the two input tiles, put
    # tile 0 on sublanes 0..3 / tile 1 on sublanes 4..7, repeat each input line across
    # the 8 output lanes it drives.
    x_pad = jnp.pad(x, ((0, BATCH - b), (0, INPUT_TILING * MEM_IN - IN_FEATURES)))
    x_tiles = x_pad.reshape(BATCH, INPUT_TILING, MEM_IN).transpose(1, 0, 2)   # [2, 4, 16]
    x_slab = jnp.repeat(x_tiles.reshape(B_PAD, MEM_IN), MEM_OUT, axis=-1)     # [8, 128]

    # Single invocation, no grid: whole working set (~0.6 MiB) is VMEM-resident.
    # TODO(synk): for batch > 8 add a leading batch grid axis with
    #             dimension_semantics=("parallel",) to shard across v7x's two TensorCores.
    out = pl.pallas_call(
        memristor_kernel,
        out_shape=jax.ShapeDtypeStruct((B_PAD, OUT_LANES), jnp.float32),
    )(x_slab, w_packed, nz_packed, rmat, bias_packed)

    return out[:b, :OUT_FEATURES]


# ------------------------------- pure-JAX reference ------------------------------------
def reference_forward(x, r_all, low_coeffs, high_coeffs, noise_all, bias):
    def poly_mul(coeffs, inputs):
        exps = jnp.arange(coeffs.shape[-1])
        return jnp.sum(coeffs * inputs[..., None] ** exps, axis=-1)

    def mem_array_forward(inputs, r, c_low, c_high, nz):
        low = poly_mul(c_low, inputs)[..., None]
        high = poly_mul(c_high, inputs)[..., None]
        raw = low * (1.0 - r) + high * r
        johnson = 4.0 * KBT * BW * jnp.abs(raw / (jnp.abs(inputs[..., None]) + NOISE_MIN_V))
        shot = 2.0 * E_CONST * jnp.abs(raw) * BW
        sigma = jnp.sqrt(johnson + shot)
        return jnp.sum(raw + nz * sigma, axis=-2)

    inp = _fake_quant(x * INPUT_FACTOR, DAC_SCALE, DAC_MIN, DAC_MAX) * HW_INPUT_VMAX
    inp = jnp.pad(inp, ((0, 0), (0, INPUT_TILING * MEM_IN - IN_FEATURES)))
    mem_out = jnp.zeros(x.shape[:-1] + (OUT_FEATURES,), jnp.float32)
    for i in range(NUM_LEVELS):
        bit = WEIGHT_PRECISION - 1 - i
        per_tile = []
        for j in range(INPUT_TILING):
            sl = inp[..., j * MEM_IN:(j + 1) * MEM_IN]
            outs = []
            for k in range(OUTPUT_TILING):
                m = mem_index(i, j, k)
                pos = mem_array_forward(sl, r_all[m, 0], low_coeffs[m, 0],
                                        high_coeffs[m, 0], noise_all[m, 0])
                neg = mem_array_forward(sl, r_all[m, 1], low_coeffs[m, 1],
                                        high_coeffs[m, 1], noise_all[m, 1])
                outs.append(_fake_quant((pos - neg) * HW_OUTPUT_CURRENT_SCALING,
                                        ADC_SCALE, ADC_MIN, ADC_MAX))
            per_tile.append(jnp.concatenate(outs, axis=-1)[..., :OUT_FEATURES])
        mem_out = mem_out + jnp.sum(jnp.stack(per_tile, axis=0), axis=0) * 2.0 ** (bit - 1)
    return mem_out * OUTPUT_FACTOR + bias


# ------------------------------- main ---------------------------------------------------
if __name__ == "__main__":
    key = jax.random.PRNGKey(0)
    k_x, k_r, k_low, k_high, k_noise, k_bias = jax.random.split(key, 6)

    x = jax.random.normal(k_x, (BATCH, IN_FEATURES), jnp.float32)

    # Deterministic synthetic memristor state (replaces CellArrayCPU programming).
    # TODO(synk): init_from_linear_quant / CellArrayCPU voltage cycling has no Pallas
    #             equivalent; r and the LLRS/HHRS polynomials are initialized synthetically.
    r_all = jax.random.uniform(k_r, (NUM_MEM, 2, MEM_IN, MEM_OUT), jnp.float32)
    low_coeffs = 0.05 * jax.random.normal(k_low, (NUM_MEM, 2, LOW_DEG), jnp.float32)
    high_coeffs = 0.05 * jax.random.normal(k_high, (NUM_MEM, 2, HIGH_DEG), jnp.float32)
    # randn_broadcast noise: one [MEM_IN, MEM_OUT] draw per array, broadcast over batch.
    noise_all = jax.random.normal(k_noise, (NUM_MEM, 2, MEM_IN, MEM_OUT), jnp.float32)
    bias = 0.1 * jax.random.normal(k_bias, (OUT_FEATURES,), jnp.float32)

    w_packed, nz_packed, rmat, bias_packed = pack_params(
        r_all, low_coeffs, high_coeffs, noise_all, bias)

    out = tiled_memristor_linear(x, w_packed, nz_packed, rmat, bias_packed)
    out = jax.block_until_ready(out)

    ref = reference_forward(x, r_all, low_coeffs, high_coeffs, noise_all, bias)
    assert out.shape == (BATCH, OUT_FEATURES), out.shape
    assert bool(jnp.all(jnp.isfinite(out)))
    assert bool(jnp.allclose(out, ref, atol=1e-2)), (out, ref)
    print("KERNEL_OK")
</pallas_src>

<mosaic_0001>
module attributes {stable_mosaic.version = 11 : i64} {
  func.func @memristor_kernel(%arg0: memref<8x128xf32, #tpu.memory_space<vmem>>, %arg1: memref<12x7x8x128xf32, #tpu.memory_space<vmem>>, %arg2: memref<12x8x128xf32, #tpu.memory_space<vmem>>, %arg3: memref<3x128x128xf32, #tpu.memory_space<vmem>>, %arg4: memref<8x128xf32, #tpu.memory_space<vmem>>, %arg5: memref<8x128xf32, #tpu.memory_space<vmem>>) attributes {dimension_semantics = [], scalar_prefetch = 0 : i64, scratch_operands = 0 : i64, tpu.core_type = #tpu.core_type<tc>} {
    %c0 = arith.constant 0 : index
    %c0_0 = arith.constant 0 : index
    %0 = vector.load %arg0[%c0, %c0_0] : memref<8x128xf32, #tpu.memory_space<vmem>>, vector<8x128xf32>
    %cst = arith.constant 1.024000e+02 : f32
    %1 = vector.broadcast %cst : f32 to vector<8x128xf32>
    %2 = arith.mulf %0, %1 : vector<8x128xf32>
    %3 = math.roundeven %2 : vector<8x128xf32>
    %cst_1 = arith.constant -1.280000e+02 : f32
    %cst_2 = arith.constant 1.280000e+02 : f32
    %4 = vector.broadcast %cst_1 : f32 to vector<8x128xf32>
    %5 = arith.maximumf %4, %3 : vector<8x128xf32>
    %6 = vector.broadcast %cst_2 : f32 to vector<8x128xf32>
    %7 = arith.minimumf %6, %5 : vector<8x128xf32>
    %cst_3 = arith.constant 4.687500e-03 : f32
    %8 = vector.broadcast %cst_3 : f32 to vector<8x128xf32>
    %9 = arith.mulf %7, %8 : vector<8x128xf32>
    %10 = math.absf %9 : vector<8x128xf32>
    %cst_4 = arith.constant 9.99999996E-13 : f32
    %11 = vector.broadcast %cst_4 : f32 to vector<8x128xf32>
    %12 = arith.addf %10, %11 : vector<8x128xf32>
    %13 = tpu.reciprocal %12 {approx = true} : vector<8x128xf32> -> vector<8x128xf32>
    %cst_5 = arith.constant 1.65677883E-28 : f32
    %14 = vector.broadcast %cst_5 : f32 to vector<8x128xf32>
    %15 = arith.mulf %14, %13 : vector<8x128xf32>
    %cst_6 = arith.constant 5.43656355E-8 : f32
    %16 = vector.broadcast %cst_6 : f32 to vector<8x128xf32>
    %17 = arith.addf %15, %16 : vector<8x128xf32>
    %18 = arith.mulf %9, %9 : vector<8x128xf32>
    %19 = arith.mulf %18, %9 : vector<8x128xf32>
    %20 = arith.mulf %19, %9 : vector<8x128xf32>
    %21 = arith.mulf %20, %9 : vector<8x128xf32>
    %22 = arith.mulf %21, %9 : vector<8x128xf32>
    %c0_7 = arith.constant 0 : index
    %c0_8 = arith.constant 0 : index
    %23 = vector.load %arg4[%c0_7, %c0_8] : memref<8x128xf32, #tpu.memory_space<vmem>>, vector<8x128xf32>
    %c0_9 = arith.constant 0 : index
    %c0_10 = arith.constant 0 : index
    %c0_11 = arith.constant 0 : index
    %c0_12 = arith.constant 0 : index
    %24 = vector.load %arg1[%c0_9, %c0_10, %c0_11, %c0_12] : memref<12x7x8x128xf32, #tpu.memory_space<vmem>>, vector<1x1x8x128xf32>
    %25 = vector.shape_cast %24 : vector<1x1x8x128xf32> to vector<8x128xf32>
    %c0_13 = arith.constant 0 : index
    %c1 = arith.constant 1 : index
    %c0_14 = arith.constant 0 : index
    %c0_15 = arith.constant 0 : index
    %26 = vector.load %arg1[%c0_13, %c1, %c0_14, %c0_15] : memref<12x7x8x128xf32, #tpu.memory_space<vmem>>, vector<1x1x8x128xf32>
    %27 = vector.shape_cast %26 : vector<1x1x8x128xf32> to vector<8x128xf32>
    %28 = arith.mulf %9, %27 : vector<8x128xf32>
    %29 = arith.addf %25, %28 : vector<8x128xf32>
    %c0_16 = arith.constant 0 : index
    %c2 = arith.constant 2 : index
    %c0_17 = arith.constant 0 : index
    %c0_18 = arith.constant 0 : index
    %30 = vector.load %arg1[%c0_16, %c2, %c0_17, %c0_18] : memref<12x7x8x128xf32, #tpu.memory_space<vmem>>, vector<1x1x8x128xf32>
    %31 = vector.shape_cast %30 : vector<1x1x8x128xf32> to vector<8x128xf32>
    %32 = arith.mulf %18, %31 : vector<8x128xf32>
    %33 = arith.addf %29, %32 : vector<8x128xf32>
    %c0_19 = arith.constant 0 : index
    %c3 = arith.constant 3 : index
    %c0_20 = arith.constant 0 : index
    %c0_21 = arith.constant 0 : index
    %34 = vector.load %arg1[%c0_19, %c3, %c0_20, %c0_21] : memref<12x7x8x128xf32, #tpu.memory_space<vmem>>, vector<1x1x8x128xf32>
    %35 = vector.shape_cast %34 : vector<1x1x8x128xf32> to vector<8x128xf32>
    %36 = arith.mulf %19, %35 : vector<8x128xf32>
    %37 = arith.addf %33, %36 : vector<8x128xf32>
    %c0_22 = arith.constant 0 : index
    %c4 = arith.constant 4 : index
    %c0_23 = arith.constant 0 : index
    %c0_24 = arith.constant 0 : index
    %38 = vector.load %arg1[%c0_22, %c4, %c0_23, %c0_24] : memref<12x7x8x128xf32, #tpu.memory_space<vmem>>, vector<1x1x8x128xf32>
    %39 = vector.shape_cast %38 : vector<1x1x8x128xf32> to vector<8x128xf32>
    %40 = arith.mulf %20, %39 : vector<8x128xf32>
    %41 = arith.addf %37, %40 : vector<8x128xf32>
    %c0_25 = arith.constant 0 : index
    %c5 = arith.constant 5 : index
    %c0_26 = arith.constant 0 : index
    %c0_27 = arith.constant 0 : index
    %42 = vector.load %arg1[%c0_25, %c5, %c0_26, %c0_27] : memref<12x7x8x128xf32, #tpu.memory_space<vmem>>, vector<1x1x8x128xf32>
    %43 = vector.shape_cast %42 : vector<1x1x8x128xf32> to vector<8x128xf32>
    %44 = arith.mulf %21, %43 : vector<8x128xf32>
    %45 = arith.addf %41, %44 : vector<8x128xf32>
    %c0_28 = arith.constant 0 : index
    %c6 = arith.constant 6 : index
    %c0_29 = arith.constant 0 : index
    %c0_30 = arith.constant 0 : index
    %46 = vector.load %arg1[%c0_28, %c6, %c0_29, %c0_30] : memref<12x7x8x128xf32, #tpu.memory_space<vmem>>, vector<1x1x8x128xf32>
    %47 = vector.shape_cast %46 : vector<1x1x8x128xf32> to vector<8x128xf32>
    %48 = arith.mulf %22, %47 : vector<8x128xf32>
    %49 = arith.addf %45, %48 : vector<8x128xf32>
    %50 = math.absf %49 : vector<8x128xf32>
    %51 = arith.mulf %50, %17 : vector<8x128xf32>
    %52 = math.sqrt %51 : vector<8x128xf32>
    %c0_31 = arith.constant 0 : index
    %c0_32 = arith.constant 0 : index
    %c0_33 = arith.constant 0 : index
    %53 = vector.load %arg2[%c0_31, %c0_32, %c0_33] : memref<12x8x128xf32, #tpu.memory_space<vmem>>, vector<1x8x128xf32>
    %54 = vector.shape_cast %53 : vector<1x8x128xf32> to vector<8x128xf32>
    %55 = arith.mulf %54, %52 : vector<8x128xf32>
    %56 = arith.addf %49, %55 : vector<8x128xf32>
    %c1_34 = arith.constant 1 : index
    %c0_35 = arith.constant 0 : index
    %c0_36 = arith.constant 0 : index
    %c0_37 = arith.constant 0 : index
    %57 = vector.load %arg1[%c1_34, %c0_35, %c0_36, %c0_37] : memref<12x7x8x128xf32, #tpu.memory_space<vmem>>, vector<1x1x8x128xf32>
    %58 = vector.shape_cast %57 : vector<1x1x8x128xf32> to vector<8x128xf32>
    %c1_38 = arith.constant 1 : index
    %c1_39 = arith.constant 1 : index
    %c0_40 = arith.constant 0 : index
    %c0_41 = arith.constant 0 : index
    %59 = vector.load %arg1[%c1_38, %c1_39, %c0_40, %c0_41] : memref<12x7x8x128xf32, #tpu.memory_space<vmem>>, vector<1x1x8x128xf32>
    %60 = vector.shape_cast %59 : vector<1x1x8x128xf32> to vector<8x128xf32>
    %61 = arith.mulf %9, %60 : vector<8x128xf32>
    %62 = arith.addf %58, %61 : vector<8x128xf32>
    %c1_42 = arith.constant 1 : index
    %c2_43 = arith.constant 2 : index
    %c0_44 = arith.constant 0 : index
    %c0_45 = arith.constant 0 : index
    %63 = vector.load %arg1[%c1_42, %c2_43, %c0_44, %c0_45] : memref<12x7x8x128xf32, #tpu.memory_space<vmem>>, vector<1x1x8x128xf32>
    %64 = vector.shape_cast %63 : vector<1x1x8x128xf32> to vector<8x128xf32>
    %65 = arith.mulf %18, %64 : vector<8x128xf32>
    %66 = arith.addf %62, %65 : vector<8x128xf32>
    %c1_46 = arith.constant 1 : index
    %c3_47 = arith.constant 3 : index
    %c0_48 = arith.constant 0 : index
    %c0_49 = arith.constant 0 : index
    %67 = vector.load %arg1[%c1_46, %c3_47, %c0_48, %c0_49] : memref<12x7x8x128xf32, #tpu.memory_space<vmem>>, vector<1x1x8x128xf32>
    %68 = vector.shape_cast %67 : vector<1x1x8x128xf32> to vector<8x128xf32>
    %69 = arith.mulf %19, %68 : vector<8x128xf32>
    %70 = arith.addf %66, %69 : vector<8x128xf32>
    %c1_50 = arith.constant 1 : index
    %c4_51 = arith.constant 4 : index
    %c0_52 = arith.constant 0 : index
    %c0_53 = arith.constant 0 : index
    %71 = vector.load %arg1[%c1_50, %c4_51, %c0_52, %c0_53] : memref<12x7x8x128xf32, #tpu.memory_space<vmem>>, vector<1x1x8x128xf32>
    %72 = vector.shape_cast %71 : vector<1x1x8x128xf32> to vector<8x128xf32>
    %73 = arith.mulf %20, %72 : vector<8x128xf32>
    %74 = arith.addf %70, %73 : vector<8x128xf32>
    %c1_54 = arith.constant 1 : index
    %c5_55 = arith.constant 5 : index
    %c0_56 = arith.constant 0 : index
    %c0_57 = arith.constant 0 : index
    %75 = vector.load %arg1[%c1_54, %c5_55, %c0_56, %c0_57] : memref<12x7x8x128xf32, #tpu.memory_space<vmem>>, vector<1x1x8x128xf32>
    %76 = vector.shape_cast %75 : vector<1x1x8x128xf32> to vector<8x128xf32>
    %77 = arith.mulf %21, %76 : vector<8x128xf32>
    %78 = arith.addf %74, %77 : vector<8x128xf32>
    %c1_58 = arith.constant 1 : index
    %c6_59 = arith.constant 6 : index
    %c0_60 = arith.constant 0 : index
    %c0_61 = arith.constant 0 : index
    %79 = vector.load %arg1[%c1_58, %c6_59, %c0_60, %c0_61] : memref<12x7x8x128xf32, #tpu.memory_space<vmem>>, vector<1x1x8x128xf32>
    %80 = vector.shape_cast %79 : vector<1x1x8x128xf32> to vector<8x128xf32>
    %81 = arith.mulf %22, %80 : vector<8x128xf32>
    %82 = arith.addf %78, %81 : vector<8x128xf32>
    %83 = math.absf %82 : vector<8x128xf32>
    %84 = arith.mulf %83, %17 : vector<8x128xf32>
    %85 = math.sqrt %84 : vector<8x128xf32>
    %c1_62 = arith.constant 1 : index
    %c0_63 = arith.constant 0 : index
    %c0_64 = arith.constant 0 : index
    %86 = vector.load %arg2[%c1_62, %c0_63, %c0_64] : memref<12x8x128xf32, #tpu.memory_space<vmem>>, vector<1x8x128xf32>
    %87 = vector.shape_cast %86 : vector<1x8x128xf32> to vector<8x128xf32>
    %88 = arith.mulf %87, %85 : vector<8x128xf32>
    %89 = arith.addf %82, %88 : vector<8x128xf32>
    %90 = arith.subf %56, %89 : vector<8x128xf32>
    %c0_65 = arith.constant 0 : index
    %c0_66 = arith.constant 0 : index
    %c0_67 = arith.constant 0 : index
    %91 = vector.load %arg3[%c0_65, %c0_66, %c0_67] : memref<3x128x128xf32, #tpu.memory_space<vmem>>, vector<1x128x128xf32>
    %92 = vector.shape_cast %91 : vector<1x128x128xf32> to vector<128x128xf32>
    %cst_68 = arith.constant dense<0.000000e+00> : vector<8x128xf32>
    %93 = tpu.matmul %90, %92, %cst_68 {dimension_numbers = #tpu.dot_dimension_numbers<[1], [0], [0], [1], [0, 0, 1, 1], [], []>} : vector<8x128xf32>, vector<128x128xf32>, vector<8x128xf32> -> vector<8x128xf32>
    %94 = math.roundeven %93 : vector<8x128xf32>
    %cst_69 = arith.constant -2.048000e+03 : f32
    %cst_70 = arith.constant 2.048000e+03 : f32
    %95 = vector.broadcast %cst_69 : f32 to vector<8x128xf32>
    %96 = arith.maximumf %95, %94 : vector<8x128xf32>
    %97 = vector.broadcast %cst_70 : f32 to vector<8x128xf32>
    %98 = arith.minimumf %97, %96 : vector<8x128xf32>
    %c4_i32 = arith.constant 4 : i32
    %99 = tpu.dynamic_rotate %98 by %c4_i32 dim 0 : vector<8x128xf32>, i32 -> vector<8x128xf32>
    %100 = arith.addf %98, %99 : vector<8x128xf32>
    %cst_71 = arith.constant 3.906250e-04 : f32
    %101 = vector.broadcast %cst_71 : f32 to vector<8x128xf32>
    %102 = arith.mulf %100, %101 : vector<8x128xf32>
    %103 = arith.addf %23, %102 : vector<8x128xf32>
    %c2_72 = arith.constant 2 : index
    %c0_73 = arith.constant 0 : index
    %c0_74 = arith.constant 0 : index
    %c0_75 = arith.constant 0 : index
    %104 = vector.load %arg1[%c2_72, %c0_73, %c0_74, %c0_75] : memref<12x7x8x128xf32, #tpu.memory_space<vmem>>, vector<1x1x8x128xf32>
    %105 = vector.shape_cast %104 : vector<1x1x8x128xf32> to vector<8x128xf32>
    %c2_76 = arith.constant 2 : index
    %c1_77 = arith.constant 1 : index
    %c0_78 = arith.constant 0 : index
    %c0_79 = arith.constant 0 : index
    %106 = vector.load %arg1[%c2_76, %c1_77, %c0_78, %c0_79] : memref<12x7x8x128xf32, #tpu.memory_space<vmem>>, vector<1x1x8x128xf32>
    %107 = vector.shape_cast %106 : vector<1x1x8x128xf32> to vector<8x128xf32>
    %108 = arith.mulf %9, %107 : vector<8x128xf32>
    %109 = arith.addf %105, %108 : vector<8x128xf32>
    %c2_80 = arith.constant 2 : index
    %c2_81 = arith.constant 2 : index
    %c0_82 = arith.constant 0 : index
    %c0_83 = arith.constant 0 : index
    %110 = vector.load %arg1[%c2_80, %c2_81, %c0_82, %c0_83] : memref<12x7x8x128xf32, #tpu.memory_space<vmem>>, vector<1x1x8x128xf32>
    %111 = vector.shape_cast %110 : vector<1x1x8x128xf32> to vector<8x128xf32>
    %112 = arith.mulf %18, %111 : vector<8x128xf32>
    %113 = arith.addf %109, %112 : vector<8x128xf32>
    %c2_84 = arith.constant 2 : index
    %c3_85 = arith.constant 3 : index
    %c0_86 = arith.constant 0 : index
    %c0_87 = arith.constant 0 : index
    %114 = vector.load %arg1[%c2_84, %c3_85, %c0_86, %c0_87] : memref<12x7x8x128xf32, #tpu.memory_space<vmem>>, vector<1x1x8x128xf32>
    %115 = vector.shape_cast %114 : vector<1x1x8x128xf32> to vector<8x128xf32>
    %116 = arith.mulf %19, %115 : vector<8x128xf32>
    %117 = arith.addf %113, %116 : vector<8x128xf32>
    %c2_88 = arith.constant 2 : index
    %c4_89 = arith.constant 4 : index
    %c0_90 = arith.constant 0 : index
    %c0_91 = arith.constant 0 : index
    %118 = vector.load %arg1[%c2_88, %c4_89, %c0_90, %c0_91] : memref<12x7x8x128xf32, #tpu.memory_space<vmem>>, vector<1x1x8x128xf32>
    %119 = vector.shape_cast %118 : vector<1x1x8x128xf32> to vector<8x128xf32>
    %120 = arith.mulf %20, %119 : vector<8x128xf32>
    %121 = arith.addf %117, %120 : vector<8x128xf32>
    %c2_92 = arith.constant 2 : index
    %c5_93 = arith.constant 5 : index
    %c0_94 = arith.constant 0 : index
    %c0_95 = arith.constant 0 : index
    %122 = vector.load %arg1[%c2_92, %c5_93, %c0_94, %c0_95] : memref<12x7x8x128xf32, #tpu.memory_space<vmem>>, vector<1x1x8x128xf32>
    %123 = vector.shape_cast %122 : vector<1x1x8x128xf32> to vector<8x128xf32>
    %124 = arith.mulf %21, %123 : vector<8x128xf32>
    %125 = arith.addf %121, %124 : vector<8x128xf32>
    %c2_96 = arith.constant 2 : index
    %c6_97 = arith.constant 6 : index
    %c0_98 = arith.constant 0 : index
    %c0_99 = arith.constant 0 : index
    %126 = vector.load %arg1[%c2_96, %c6_97, %c0_98, %c0_99] : memref<12x7x8x128xf32, #tpu.memory_space<vmem>>, vector<1x1x8x128xf32>
    %127 = vector.shape_cast %126 : vector<1x1x8x128xf32> to vector<8x128xf32>
    %128 = arith.mulf %22, %127 : vector<8x128xf32>
    %129 = arith.addf %125, %128 : vector<8x128xf32>
    %130 = math.absf %129 : vector<8x128xf32>
    %131 = arith.mulf %130, %17 : vector<8x128xf32>
    %132 = math.sqrt %131 : vector<8x128xf32>
    %c2_100 = arith.constant 2 : index
    %c0_101 = arith.constant 0 : index
    %c0_102 = arith.constant 0 : index
    %133 = vector.load %arg2[%c2_100, %c0_101, %c0_102] : memref<12x8x128xf32, #tpu.memory_space<vmem>>, vector<1x8x128xf32>
    %134 = vector.shape_cast %133 : vector<1x8x128xf32> to vector<8x128xf32>
    %135 = arith.mulf %134, %132 : vector<8x128xf32>
    %136 = arith.addf %129, %135 : vector<8x128xf32>
    %c3_103 = arith.constant 3 : index
    %c0_104 = arith.constant 0 : index
    %c0_105 = arith.constant 0 : index
    %c0_106 = arith.constant 0 : index
    %137 = vector.load %arg1[%c3_103, %c0_104, %c0_105, %c0_106] : memref<12x7x8x128xf32, #tpu.memory_space<vmem>>, vector<1x1x8x128xf32>
    %138 = vector.shape_cast %137 : vector<1x1x8x128xf32> to vector<8x128xf32>
    %c3_107 = arith.constant 3 : index
    %c1_108 = arith.constant 1 : index
    %c0_109 = arith.constant 0 : index
    %c0_110 = arith.constant 0 : index
    %139 = vector.load %arg1[%c3_107, %c1_108, %c0_109, %c0_110] : memref<12x7x8x128xf32, #tpu.memory_space<vmem>>, vector<1x1x8x128xf32>
    %140 = vector.shape_cast %139 : vector<1x1x8x128xf32> to vector<8x128xf32>
    %141 = arith.mulf %9, %140 : vector<8x128xf32>
    %142 = arith.addf %138, %141 : vector<8x128xf32>
    %c3_111 = arith.constant 3 : index
    %c2_112 = arith.constant 2 : index
    %c0_113 = arith.constant 0 : index
    %c0_114 = arith.constant 0 : index
    %143 = vector.load %arg1[%c3_111, %c2_112, %c0_113, %c0_114] : memref<12x7x8x128xf32, #tpu.memory_space<vmem>>, vector<1x1x8x128xf32>
    %144 = vector.shape_cast %143 : vector<1x1x8x128xf32> to vector<8x128xf32>
    %145 = arith.mulf %18, %144 : vector<8x128xf32>
    %146 = arith.addf %142, %145 : vector<8x128xf32>
    %c3_115 = arith.constant 3 : index
    %c3_116 = arith.constant 3 : index
    %c0_117 = arith.constant 0 : index
    %c0_118 = arith.constant 0 : index
    %147 = vector.load %arg1[%c3_115, %c3_116, %c0_117, %c0_118] : memref<12x7x8x128xf32, #tpu.memory_space<vmem>>, vector<1x1x8x128xf32>
    %148 = vector.shape_cast %147 : vector<1x1x8x128xf32> to vector<8x128xf32>
    %149 = arith.mulf %19, %148 : vector<8x128xf32>
    %150 = arith.addf %146, %149 : vector<8x128xf32>
    %c3_119 = arith.constant 3 : index
    %c4_120 = arith.constant 4 : index
    %c0_121 = arith.constant 0 : index
    %c0_122 = arith.constant 0 : index
    %151 = vector.load %arg1[%c3_119, %c4_120, %c0_121, %c0_122] : memref<12x7x8x128xf32, #tpu.memory_space<vmem>>, vector<1x1x8x128xf32>
    %152 = vector.shape_cast %151 : vector<1x1x8x128xf32> to vector<8x128xf32>
    %153 = arith.mulf %20, %152 : vector<8x128xf32>
    %154 = arith.addf %150, %153 : vector<8x128xf32>
    %c3_123 = arith.constant 3 : index
    %c5_124 = arith.constant 5 : index
    %c0_125 = arith.constant 0 : index
    %c0_126 = arith.constant 0 : index
    %155 = vector.load %arg1[%c3_123, %c5_124, %c0_125, %c0_126] : memref<12x7x8x128xf32, #tpu.memory_space<vmem>>, vector<1x1x8x128xf32>
    %156 = vector.shape_cast %155 : vector<1x1x8x128xf32> to vector<8x128xf32>
    %157 = arith.mulf %21, %156 : vector<8x128xf32>
    %158 = arith.addf %154, %157 : vector<8x128xf32>
    %c3_127 = arith.constant 3 : index
    %c6_128 = arith.constant 6 : index
    %c0_129 = arith.constant 0 : index
    %c0_130 = arith.constant 0 : index
    %159 = vector.load %arg1[%c3_127, %c6_128, %c0_129, %c0_130] : memref<12x7x8x128xf32, #tpu.memory_space<vmem>>, vector<1x1x8x128xf32>
    %160 = vector.shape_cast %159 : vector<1x1x8x128xf32> to vector<8x128xf32>
    %161 = arith.mulf %22, %160 : vector<8x128xf32>
    %162 = arith.addf %158, %161 : vector<8x128xf32>
    %163 = math.absf %162 : vector<8x128xf32>
    %164 = arith.mulf %163, %17 : vector<8x128xf32>
    %165 = math.sqrt %164 : vector<8x128xf32>
    %c3_131 = arith.constant 3 : index
    %c0_132 = arith.constant 0 : index
    %c0_133 = arith.constant 0 : index
    %166 = vector.load %arg2[%c3_131, %c0_132, %c0_133] : memref<12x8x128xf32, #tpu.memory_space<vmem>>, vector<1x8x128xf32>
    %167 = vector.shape_cast %166 : vector<1x8x128xf32> to vector<8x128xf32>
    %168 = arith.mulf %167, %165 : vector<8x128xf32>
    %169 = arith.addf %162, %168 : vector<8x128xf32>
    %170 = arith.subf %136, %169 : vector<8x128xf32>
    %c1_134 = arith.constant 1 : index
    %c0_135 = arith.constant 0 : index
    %c0_136 = arith.constant 0 : index
    %171 = vector.load %arg3[%c1_134, %c0_135, %c0_136] : memref<3x128x128xf32, #tpu.memory_space<vmem>>, vector<1x128x128xf32>
    %172 = vector.shape_cast %171 : vector<1x128x128xf32> to vector<128x128xf32>
    %cst_137 = arith.constant dense<0.000000e+00> : vector<8x128xf32>
    %173 = tpu.matmul %170, %172, %cst_137 {dimension_numbers = #tpu.dot_dimension_numbers<[1], [0], [0], [1], [0, 0, 1, 1], [], []>} : vector<8x128xf32>, vector<128x128xf32>, vector<8x128xf32> -> vector<8x128xf32>
    %174 = math.roundeven %173 : vector<8x128xf32>
    %cst_138 = arith.constant -2.048000e+03 : f32
    %cst_139 = arith.constant 2.048000e+03 : f32
    %175 = vector.broadcast %cst_138 : f32 to vector<8x128xf32>
    %176 = arith.maximumf %175, %174 : vector<8x128xf32>
    %177 = vector.broadcast %cst_139 : f32 to vector<8x128xf32>
    %178 = arith.minimumf %177, %176 : vector<8x128xf32>
    %c4_i32_140 = arith.constant 4 : i32
    %179 = tpu.dynamic_rotate %178 by %c4_i32_140 dim 0 : vector<8x128xf32>, i32 -> vector<8x128xf32>
    %180 = arith.addf %178, %179 : vector<8x128xf32>
    %cst_141 = arith.constant 3.906250e-04 : f32
    %181 = vector.broadcast %cst_141 : f32 to vector<8x128xf32>
    %182 = arith.mulf %180, %181 : vector<8x128xf32>
    %183 = arith.addf %103, %182 : vector<8x128xf32>
    %c4_142 = arith.constant 4 : index
    %c0_143 = arith.constant 0 : index
    %c0_144 = arith.constant 0 : index
    %c0_145 = arith.constant 0 : index
    %184 = vector.load %arg1[%c4_142, %c0_143, %c0_144, %c0_145] : memref<12x7x8x128xf32, #tpu.memory_space<vmem>>, vector<1x1x8x128xf32>
    %185 = vector.shape_cast %184 : vector<1x1x8x128xf32> to vector<8x128xf32>
    %c4_146 = arith.constant 4 : index
    %c1_147 = arith.constant 1 : index
    %c0_148 = arith.constant 0 : index
    %c0_149 = arith.constant 0 : index
    %186 = vector.load %arg1[%c4_146, %c1_147, %c0_148, %c0_149] : memref<12x7x8x128xf32, #tpu.memory_space<vmem>>, vector<1x1x8x128xf32>
    %187 = vector.shape_cast %186 : vector<1x1x8x128xf32> to vector<8x128xf32>
    %188 = arith.mulf %9, %187 : vector<8x128xf32>
    %189 = arith.addf %185, %188 : vector<8x128xf32>
    %c4_150 = arith.constant 4 : index
    %c2_151 = arith.constant 2 : index
    %c0_152 = arith.constant 0 : index
    %c0_153 = arith.constant 0 : index
    %190 = vector.load %arg1[%c4_150, %c2_151, %c0_152, %c0_153] : memref<12x7x8x128xf32, #tpu.memory_space<vmem>>, vector<1x1x8x128xf32>
    %191 = vector.shape_cast %190 : vector<1x1x8x128xf32> to vector<8x128xf32>
    %192 = arith.mulf %18, %191 : vector<8x128xf32>
    %193 = arith.addf %189, %192 : vector<8x128xf32>
    %c4_154 = arith.constant 4 : index
    %c3_155 = arith.constant 3 : index
    %c0_156 = arith.constant 0 : index
    %c0_157 = arith.constant 0 : index
    %194 = vector.load %arg1[%c4_154, %c3_155, %c0_156, %c0_157] : memref<12x7x8x128xf32, #tpu.memory_space<vmem>>, vector<1x1x8x128xf32>
    %195 = vector.shape_cast %194 : vector<1x1x8x128xf32> to vector<8x128xf32>
    %196 = arith.mulf %19, %195 : vector<8x128xf32>
    %197 = arith.addf %193, %196 : vector<8x128xf32>
    %c4_158 = arith.constant 4 : index
    %c4_159 = arith.constant 4 : index
    %c0_160 = arith.constant 0 : index
    %c0_161 = arith.constant 0 : index
    %198 = vector.load %arg1[%c4_158, %c4_159, %c0_160, %c0_161] : memref<12x7x8x128xf32, #tpu.memory_space<vmem>>, vector<1x1x8x128xf32>
    %199 = vector.shape_cast %198 : vector<1x1x8x128xf32> to vector<8x128xf32>
    %200 = arith.mulf %20, %199 : vector<8x128xf32>
    %201 = arith.addf %197, %200 : vector<8x128xf32>
    %c4_162 = arith.constant 4 : index
    %c5_163 = arith.constant 5 : index
    %c0_164 = arith.constant 0 : index
    %c0_165 = arith.constant 0 : index
    %202 = vector.load %arg1[%c4_162, %c5_163, %c0_164, %c0_165] : memref<12x7x8x128xf32, #tpu.memory_space<vmem>>, vector<1x1x8x128xf32>
    %203 = vector.shape_cast %202 : vector<1x1x8x128xf32> to vector<8x128xf32>
    %204 = arith.mulf %21, %203 : vector<8x128xf32>
    %205 = arith.addf %201, %204 : vector<8x128xf32>
    %c4_166 = arith.constant 4 : index
    %c6_167 = arith.constant 6 : index
    %c0_168 = arith.constant 0 : index
    %c0_169 = arith.constant 0 : index
    %206 = vector.load %arg1[%c4_166, %c6_167, %c0_168, %c0_169] : memref<12x7x8x128xf32, #tpu.memory_space<vmem>>, vector<1x1x8x128xf32>
    %207 = vector.shape_cast %206 : vector<1x1x8x128xf32> to vector<8x128xf32>
    %208 = arith.mulf %22, %207 : vector<8x128xf32>
    %209 = arith.addf %205, %208 : vector<8x128xf32>
    %210 = math.absf %209 : vector<8x128xf32>
    %211 = arith.mulf %210, %17 : vector<8x128xf32>
    %212 = math.sqrt %211 : vector<8x128xf32>
    %c4_170 = arith.constant 4 : index
    %c0_171 = arith.constant 0 : index
    %c0_172 = arith.constant 0 : index
    %213 = vector.load %arg2[%c4_170, %c0_171, %c0_172] : memref<12x8x128xf32, #tpu.memory_space<vmem>>, vector<1x8x128xf32>
    %214 = vector.shape_cast %213 : vector<1x8x128xf32> to vector<8x128xf32>
    %215 = arith.mulf %214, %212 : vector<8x128xf32>
    %216 = arith.addf %209, %215 : vector<8x128xf32>
    %c5_173 = arith.constant 5 : index
    %c0_174 = arith.constant 0 : index
    %c0_175 = arith.constant 0 : index
    %c0_176 = arith.constant 0 : index
    %217 = vector.load %arg1[%c5_173, %c0_174, %c0_175, %c0_176] : memref<12x7x8x128xf32, #tpu.memory_space<vmem>>, vector<1x1x8x128xf32>
    %218 = vector.shape_cast %217 : vector<1x1x8x128xf32> to vector<8x128xf32>
    %c5_177 = arith.constant 5 : index
    %c1_178 = arith.constant 1 : index
    %c0_179 = arith.constant 0 : index
    %c0_180 = arith.constant 0 : index
    %219 = vector.load %arg1[%c5_177, %c1_178, %c0_179, %c0_180] : memref<12x7x8x128xf32, #tpu.memory_space<vmem>>, vector<1x1x8x128xf32>
    %220 = vector.shape_cast %219 : vector<1x1x8x128xf32> to vector<8x128xf32>
    %221 = arith.mulf %9, %220 : vector<8x128xf32>
    %222 = arith.addf %218, %221 : vector<8x128xf32>
    %c5_181 = arith.constant 5 : index
    %c2_182 = arith.constant 2 : index
    %c0_183 = arith.constant 0 : index
    %c0_184 = arith.constant 0 : index
    %223 = vector.load %arg1[%c5_181, %c2_182, %c0_183, %c0_184] : memref<12x7x8x128xf32, #tpu.memory_space<vmem>>, vector<1x1x8x128xf32>
    %224 = vector.shape_cast %223 : vector<1x1x8x128xf32> to vector<8x128xf32>
    %225 = arith.mulf %18, %224 : vector<8x128xf32>
    %226 = arith.addf %222, %225 : vector<8x128xf32>
    %c5_185 = arith.constant 5 : index
    %c3_186 = arith.constant 3 : index
    %c0_187 = arith.constant 0 : index
    %c0_188 = arith.constant 0 : index
    %227 = vector.load %arg1[%c5_185, %c3_186, %c0_187, %c0_188] : memref<12x7x8x128xf32, #tpu.memory_space<vmem>>, vector<1x1x8x128xf32>
    %228 = vector.shape_cast %227 : vector<1x1x8x128xf32> to vector<8x128xf32>
    %229 = arith.mulf %19, %228 : vector<8x128xf32>
    %230 = arith.addf %226, %229 : vector<8x128xf32>
    %c5_189 = arith.constant 5 : index
    %c4_190 = arith.constant 4 : index
    %c0_191 = arith.constant 0 : index
    %c0_192 = arith.constant 0 : index
    %231 = vector.load %arg1[%c5_189, %c4_190, %c0_191, %c0_192] : memref<12x7x8x128xf32, #tpu.memory_space<vmem>>, vector<1x1x8x128xf32>
    %232 = vector.shape_cast %231 : vector<1x1x8x128xf32> to vector<8x128xf32>
    %233 = arith.mulf %20, %232 : vector<8x128xf32>
    %234 = arith.addf %230, %233 : vector<8x128xf32>
    %c5_193 = arith.constant 5 : index
    %c5_194 = arith.constant 5 : index
    %c0_195 = arith.constant 0 : index
    %c0_196 = arith.constant 0 : index
    %235 = vector.load %arg1[%c5_193, %c5_194, %c0_195, %c0_196] : memref<12x7x8x128xf32, #tpu.memory_space<vmem>>, vector<1x1x8x128xf32>
    %236 = vector.shape_cast %235 : vector<1x1x8x128xf32> to vector<8x128xf32>
    %237 = arith.mulf %21, %236 : vector<8x128xf32>
    %238 = arith.addf %234, %237 : vector<8x128xf32>
    %c5_197 = arith.constant 5 : index
    %c6_198 = arith.constant 6 : index
    %c0_199 = arith.constant 0 : index
    %c0_200 = arith.constant 0 : index
    %239 = vector.load %arg1[%c5_197, %c6_198, %c0_199, %c0_200] : memref<12x7x8x128xf32, #tpu.memory_space<vmem>>, vector<1x1x8x128xf32>
    %240 = vector.shape_cast %239 : vector<1x1x8x128xf32> to vector<8x128xf32>
    %241 = arith.mulf %22, %240 : vector<8x128xf32>
    %242 = arith.addf %238, %241 : vector<8x128xf32>
    %243 = math.absf %242 : vector<8x128xf32>
    %244 = arith.mulf %243, %17 : vector<8x128xf32>
    %245 = math.sqrt %244 : vector<8x128xf32>
    %c5_201 = arith.constant 5 : index
    %c0_202 = arith.constant 0 : index
    %c0_203 = arith.constant 0 : index
    %246 = vector.load %arg2[%c5_201, %c0_202, %c0_203] : memref<12x8x128xf32, #tpu.memory_space<vmem>>, vector<1x8x128xf32>
    %247 = vector.shape_cast %246 : vector<1x8x128xf32> to vector<8x128xf32>
    %248 = arith.mulf %247, %245 : vector<8x128xf32>
    %249 = arith.addf %242, %248 : vector<8x128xf32>
    %250 = arith.subf %216, %249 : vector<8x128xf32>
    %c2_204 = arith.constant 2 : index
    %c0_205 = arith.constant 0 : index
    %c0_206 = arith.constant 0 : index
    %251 = vector.load %arg3[%c2_204, %c0_205, %c0_206] : memref<3x128x128xf32, #tpu.memory_space<vmem>>, vector<1x128x128xf32>
    %252 = vector.shape_cast %251 : vector<1x128x128xf32> to vector<128x128xf32>
    %cst_207 = arith.constant dense<0.000000e+00> : vector<8x128xf32>
    %253 = tpu.matmul %250, %252, %cst_207 {dimension_numbers = #tpu.dot_dimension_numbers<[1], [0], [0], [1], [0, 0, 1, 1], [], []>} : vector<8x128xf32>, vector<128x128xf32>, vector<8x128xf32> -> vector<8x128xf32>
    %254 = math.roundeven %253 : vector<8x128xf32>
    %cst_208 = arith.constant -2.048000e+03 : f32
    %cst_209 = arith.constant 2.048000e+03 : f32
    %255 = vector.broadcast %cst_208 : f32 to vector<8x128xf32>
    %256 = arith.maximumf %255, %254 : vector<8x128xf32>
    %257 = vector.broadcast %cst_209 : f32 to vector<8x128xf32>
    %258 = arith.minimumf %257, %256 : vector<8x128xf32>
    %c4_i32_210 = arith.constant 4 : i32
    %259 = tpu.dynamic_rotate %258 by %c4_i32_210 dim 0 : vector<8x128xf32>, i32 -> vector<8x128xf32>
    %260 = arith.addf %258, %259 : vector<8x128xf32>
    %cst_211 = arith.constant 3.906250e-04 : f32
    %261 = vector.broadcast %cst_211 : f32 to vector<8x128xf32>
    %262 = arith.mulf %260, %261 : vector<8x128xf32>
    %263 = arith.addf %183, %262 : vector<8x128xf32>
    %c6_212 = arith.constant 6 : index
    %c0_213 = arith.constant 0 : index
    %c0_214 = arith.constant 0 : index
    %c0_215 = arith.constant 0 : index
    %264 = vector.load %arg1[%c6_212, %c0_213, %c0_214, %c0_215] : memref<12x7x8x128xf32, #tpu.memory_space<vmem>>, vector<1x1x8x128xf32>
    %265 = vector.shape_cast %264 : vector<1x1x8x128xf32> to vector<8x128xf32>
    %c6_216 = arith.constant 6 : index
    %c1_217 = arith.constant 1 : index
    %c0_218 = arith.constant 0 : index
    %c0_219 = arith.constant 0 : index
    %266 = vector.load %arg1[%c6_216, %c1_217, %c0_218, %c0_219] : memref<12x7x8x128xf32, #tpu.memory_space<vmem>>, vector<1x1x8x128xf32>
    %267 = vector.shape_cast %266 : vector<1x1x8x128xf32> to vector<8x128xf32>
    %268 = arith.mulf %9, %267 : vector<8x128xf32>
    %269 = arith.addf %265, %268 : vector<8x128xf32>
    %c6_220 = arith.constant 6 : index
    %c2_221 = arith.constant 2 : index
    %c0_222 = arith.constant 0 : index
    %c0_223 = arith.constant 0 : index
    %270 = vector.load %arg1[%c6_220, %c2_221, %c0_222, %c0_223] : memref<12x7x8x128xf32, #tpu.memory_space<vmem>>, vector<1x1x8x128xf32>
    %271 = vector.shape_cast %270 : vector<1x1x8x128xf32> to vector<8x128xf32>
    %272 = arith.mulf %18, %271 : vector<8x128xf32>
    %273 = arith.addf %269, %272 : vector<8x128xf32>
    %c6_224 = arith.constant 6 : index
    %c3_225 = arith.constant 3 : index
    %c0_226 = arith.constant 0 : index
    %c0_227 = arith.constant 0 : index
    %274 = vector.load %arg1[%c6_224, %c3_225, %c0_226, %c0_227] : memref<12x7x8x128xf32, #tpu.memory_space<vmem>>, vector<1x1x8x128xf32>
    %275 = vector.shape_cast %274 : vector<1x1x8x128xf32> to vector<8x128xf32>
    %276 = arith.mulf %19, %275 : vector<8x128xf32>
    %277 = arith.addf %273, %276 : vector<8x128xf32>
    %c6_228 = arith.constant 6 : index
    %c4_229 = arith.constant 4 : index
    %c0_230 = arith.constant 0 : index
    %c0_231 = arith.constant 0 : index
    %278 = vector.load %arg1[%c6_228, %c4_229, %c0_230, %c0_231] : memref<12x7x8x128xf32, #tpu.memory_space<vmem>>, vector<1x1x8x128xf32>
    %279 = vector.shape_cast %278 : vector<1x1x8x128xf32> to vector<8x128xf32>
    %280 = arith.mulf %20, %279 : vector<8x128xf32>
    %281 = arith.addf %277, %280 : vector<8x128xf32>
    %c6_232 = arith.constant 6 : index
    %c5_233 = arith.constant 5 : index
    %c0_234 = arith.constant 0 : index
    %c0_235 = arith.constant 0 : index
    %282 = vector.load %arg1[%c6_232, %c5_233, %c0_234, %c0_235] : memref<12x7x8x128xf32, #tpu.memory_space<vmem>>, vector<1x1x8x128xf32>
    %283 = vector.shape_cast %282 : vector<1x1x8x128xf32> to vector<8x128xf32>
    %284 = arith.mulf %21, %283 : vector<8x128xf32>
    %285 = arith.addf %281, %284 : vector<8x128xf32>
    %c6_236 = arith.constant 6 : index
    %c6_237 = arith.constant 6 : index
    %c0_238 = arith.constant 0 : index
    %c0_239 = arith.constant 0 : index
    %286 = vector.load %arg1[%c6_236, %c6_237, %c0_238, %c0_239] : memref<12x7x8x128xf32, #tpu.memory_space<vmem>>, vector<1x1x8x128xf32>
    %287 = vector.shape_cast %286 : vector<1x1x8x128xf32> to vector<8x128xf32>
    %288 = arith.mulf %22, %287 : vector<8x128xf32>
    %289 = arith.addf %285, %288 : vector<8x128xf32>
    %290 = math.absf %289 : vector<8x128xf32>
    %291 = arith.mulf %290, %17 : vector<8x128xf32>
    %292 = math.sqrt %291 : vector<8x128xf32>
    %c6_240 = arith.constant 6 : index
    %c0_241 = arith.constant 0 : index
    %c0_242 = arith.constant 0 : index
    %293 = vector.load %arg2[%c6_240, %c0_241, %c0_242] : memref<12x8x128xf32, #tpu.memory_space<vmem>>, vector<1x8x128xf32>
    %294 = vector.shape_cast %293 : vector<1x8x128xf32> to vector<8x128xf32>
    %295 = arith.mulf %294, %292 : vector<8x128xf32>
    %296 = arith.addf %289, %295 : vector<8x128xf32>
    %c7 = arith.constant 7 : index
    %c0_243 = arith.constant 0 : index
    %c0_244 = arith.constant 0 : index
    %c0_245 = arith.constant 0 : index
    %297 = vector.load %arg1[%c7, %c0_243, %c0_244, %c0_245] : memref<12x7x8x128xf32, #tpu.memory_space<vmem>>, vector<1x1x8x128xf32>
    %298 = vector.shape_cast %297 : vector<1x1x8x128xf32> to vector<8x128xf32>
    %c7_246 = arith.constant 7 : index
    %c1_247 = arith.constant 1 : index
    %c0_248 = arith.constant 0 : index
    %c0_249 = arith.constant 0 : index
    %299 = vector.load %arg1[%c7_246, %c1_247, %c0_248, %c0_249] : memref<12x7x8x128xf32, #tpu.memory_space<vmem>>, vector<1x1x8x128xf32>
    %300 = vector.shape_cast %299 : vector<1x1x8x128xf32> to vector<8x128xf32>
    %301 = arith.mulf %9, %300 : vector<8x128xf32>
    %302 = arith.addf %298, %301 : vector<8x128xf32>
    %c7_250 = arith.constant 7 : index
    %c2_251 = arith.constant 2 : index
    %c0_252 = arith.constant 0 : index
    %c0_253 = arith.constant 0 : index
    %303 = vector.load %arg1[%c7_250, %c2_251, %c0_252, %c0_253] : memref<12x7x8x128xf32, #tpu.memory_space<vmem>>, vector<1x1x8x128xf32>
    %304 = vector.shape_cast %303 : vector<1x1x8x128xf32> to vector<8x128xf32>
    %305 = arith.mulf %18, %304 : vector<8x128xf32>
    %306 = arith.addf %302, %305 : vector<8x128xf32>
    %c7_254 = arith.constant 7 : index
    %c3_255 = arith.constant 3 : index
    %c0_256 = arith.constant 0 : index
    %c0_257 = arith.constant 0 : index
    %307 = vector.load %arg1[%c7_254, %c3_255, %c0_256, %c0_257] : memref<12x7x8x128xf32, #tpu.memory_space<vmem>>, vector<1x1x8x128xf32>
    %308 = vector.shape_cast %307 : vector<1x1x8x128xf32> to vector<8x128xf32>
    %309 = arith.mulf %19, %308 : vector<8x128xf32>
    %310 = arith.addf %306, %309 : vector<8x128xf32>
    %c7_258 = arith.constant 7 : index
    %c4_259 = arith.constant 4 : index
    %c0_260 = arith.constant 0 : index
    %c0_261 = arith.constant 0 : index
    %311 = vector.load %arg1[%c7_258, %c4_259, %c0_260, %c0_261] : memref<12x7x8x128xf32, #tpu.memory_space<vmem>>, vector<1x1x8x128xf32>
    %312 = vector.shape_cast %311 : vector<1x1x8x128xf32> to vector<8x128xf32>
    %313 = arith.mulf %20, %312 : vector<8x128xf32>
    %314 = arith.addf %310, %313 : vector<8x128xf32>
    %c7_262 = arith.constant 7 : index
    %c5_263 = arith.constant 5 : index
    %c0_264 = arith.constant 0 : index
    %c0_265 = arith.constant 0 : index
    %315 = vector.load %arg1[%c7_262, %c5_263, %c0_264, %c0_265] : memref<12x7x8x128xf32, #tpu.memory_space<vmem>>, vector<1x1x8x128xf32>
    %316 = vector.shape_cast %315 : vector<1x1x8x128xf32> to vector<8x128xf32>
    %317 = arith.mulf %21, %316 : vector<8x128xf32>
    %318 = arith.addf %314, %317 : vector<8x128xf32>
    %c7_266 = arith.constant 7 : index
    %c6_267 = arith.constant 6 : index
    %c0_268 = arith.constant 0 : index
    %c0_269 = arith.constant 0 : index
    %319 = vector.load %arg1[%c7_266, %c6_267, %c0_268, %c0_269] : memref<12x7x8x128xf32, #tpu.memory_space<vmem>>, vector<1x1x8x128xf32>
    %320 = vector.shape_cast %319 : vector<1x1x8x128xf32> to vector<8x128xf32>
    %321 = arith.mulf %22, %320 : vector<8x128xf32>
    %322 = arith.addf %318, %321 : vector<8x128xf32>
    %323 = math.absf %322 : vector<8x128xf32>
    %324 = arith.mulf %323, %17 : vector<8x128xf32>
    %325 = math.sqrt %324 : vector<8x128xf32>
    %c7_270 = arith.constant 7 : index
    %c0_271 = arith.constant 0 : index
    %c0_272 = arith.constant 0 : index
    %326 = vector.load %arg2[%c7_270, %c0_271, %c0_272] : memref<12x8x128xf32, #tpu.memory_space<vmem>>, vector<1x8x128xf32>
    %327 = vector.shape_cast %326 : vector<1x8x128xf32> to vector<8x128xf32>
    %328 = arith.mulf %327, %325 : vector<8x128xf32>
    %329 = arith.addf %322, %328 : vector<8x128xf32>
    %330 = arith.subf %296, %329 : vector<8x128xf32>
    %c0_273 = arith.constant 0 : index
    %c0_274 = arith.constant 0 : index
    %c0_275 = arith.constant 0 : index
    %331 = vector.load %arg3[%c0_273, %c0_274, %c0_275] : memref<3x128x128xf32, #tpu.memory_space<vmem>>, vector<1x128x128xf32>
    %332 = vector.shape_cast %331 : vector<1x128x128xf32> to vector<128x128xf32>
    %cst_276 = arith.constant dense<0.000000e+00> : vector<8x128xf32>
    %333 = tpu.matmul %330, %332, %cst_276 {dimension_numbers = #tpu.dot_dimension_numbers<[1], [0], [0], [1], [0, 0, 1, 1], [], []>} : vector<8x128xf32>, vector<128x128xf32>, vector<8x128xf32> -> vector<8x128xf32>
    %334 = math.roundeven %333 : vector<8x128xf32>
    %cst_277 = arith.constant -2.048000e+03 : f32
    %cst_278 = arith.constant 2.048000e+03 : f32
    %335 = vector.broadcast %cst_277 : f32 to vector<8x128xf32>
    %336 = arith.maximumf %335, %334 : vector<8x128xf32>
    %337 = vector.broadcast %cst_278 : f32 to vector<8x128xf32>
    %338 = arith.minimumf %337, %336 : vector<8x128xf32>
    %c4_i32_279 = arith.constant 4 : i32
    %339 = tpu.dynamic_rotate %338 by %c4_i32_279 dim 0 : vector<8x128xf32>, i32 -> vector<8x128xf32>
    %340 = arith.addf %338, %339 : vector<8x128xf32>
    %cst_280 = arith.constant 1.95312503E-4 : f32
    %341 = vector.broadcast %cst_280 : f32 to vector<8x128xf32>
    %342 = arith.mulf %340, %341 : vector<8x128xf32>
    %343 = arith.addf %263, %342 : vector<8x128xf32>
    %c8 = arith.constant 8 : index
    %c0_281 = arith.constant 0 : index
    %c0_282 = arith.constant 0 : index
    %c0_283 = arith.constant 0 : index
    %344 = vector.load %arg1[%c8, %c0_281, %c0_282, %c0_283] : memref<12x7x8x128xf32, #tpu.memory_space<vmem>>, vector<1x1x8x128xf32>
    %345 = vector.shape_cast %344 : vector<1x1x8x128xf32> to vector<8x128xf32>
    %c8_284 = arith.constant 8 : index
    %c1_285 = arith.constant 1 : index
    %c0_286 = arith.constant 0 : index
    %c0_287 = arith.constant 0 : index
    %346 = vector.load %arg1[%c8_284, %c1_285, %c0_286, %c0_287] : memref<12x7x8x128xf32, #tpu.memory_space<vmem>>, vector<1x1x8x128xf32>
    %347 = vector.shape_cast %346 : vector<1x1x8x128xf32> to vector<8x128xf32>
    %348 = arith.mulf %9, %347 : vector<8x128xf32>
    %349 = arith.addf %345, %348 : vector<8x128xf32>
    %c8_288 = arith.constant 8 : index
    %c2_289 = arith.constant 2 : index
    %c0_290 = arith.constant 0 : index
    %c0_291 = arith.constant 0 : index
    %350 = vector.load %arg1[%c8_288, %c2_289, %c0_290, %c0_291] : memref<12x7x8x128xf32, #tpu.memory_space<vmem>>, vector<1x1x8x128xf32>
    %351 = vector.shape_cast %350 : vector<1x1x8x128xf32> to vector<8x128xf32>
    %352 = arith.mulf %18, %351 : vector<8x128xf32>
    %353 = arith.addf %349, %352 : vector<8x128xf32>
    %c8_292 = arith.constant 8 : index
    %c3_293 = arith.constant 3 : index
    %c0_294 = arith.constant 0 : index
    %c0_295 = arith.constant 0 : index
    %354 = vector.load %arg1[%c8_292, %c3_293, %c0_294, %c0_295] : memref<12x7x8x128xf32, #tpu.memory_space<vmem>>, vector<1x1x8x128xf32>
    %355 = vector.shape_cast %354 : vector<1x1x8x128xf32> to vector<8x128xf32>
    %356 = arith.mulf %19, %355 : vector<8x128xf32>
    %357 = arith.addf %353, %356 : vector<8x128xf32>
    %c8_296 = arith.constant 8 : index
    %c4_297 = arith.constant 4 : index
    %c0_298 = arith.constant 0 : index
    %c0_299 = arith.constant 0 : index
    %358 = vector.load %arg1[%c8_296, %c4_297, %c0_298, %c0_299] : memref<12x7x8x128xf32, #tpu.memory_space<vmem>>, vector<1x1x8x128xf32>
    %359 = vector.shape_cast %358 : vector<1x1x8x128xf32> to vector<8x128xf32>
    %360 = arith.mulf %20, %359 : vector<8x128xf32>
    %361 = arith.addf %357, %360 : vector<8x128xf32>
    %c8_300 = arith.constant 8 : index
    %c5_301 = arith.constant 5 : index
    %c0_302 = arith.constant 0 : index
    %c0_303 = arith.constant 0 : index
    %362 = vector.load %arg1[%c8_300, %c5_301, %c0_302, %c0_303] : memref<12x7x8x128xf32, #tpu.memory_space<vmem>>, vector<1x1x8x128xf32>
    %363 = vector.shape_cast %362 : vector<1x1x8x128xf32> to vector<8x128xf32>
    %364 = arith.mulf %21, %363 : vector<8x128xf32>
    %365 = arith.addf %361, %364 : vector<8x128xf32>
    %c8_304 = arith.constant 8 : index
    %c6_305 = arith.constant 6 : index
    %c0_306 = arith.constant 0 : index
    %c0_307 = arith.constant 0 : index
    %366 = vector.load %arg1[%c8_304, %c6_305, %c0_306, %c0_307] : memref<12x7x8x128xf32, #tpu.memory_space<vmem>>, vector<1x1x8x128xf32>
    %367 = vector.shape_cast %366 : vector<1x1x8x128xf32> to vector<8x128xf32>
    %368 = arith.mulf %22, %367 : vector<8x128xf32>
    %369 = arith.addf %365, %368 : vector<8x128xf32>
    %370 = math.absf %369 : vector<8x128xf32>
    %371 = arith.mulf %370, %17 : vector<8x128xf32>
    %372 = math.sqrt %371 : vector<8x128xf32>
    %c8_308 = arith.constant 8 : index
    %c0_309 = arith.constant 0 : index
    %c0_310 = arith.constant 0 : index
    %373 = vector.load %arg2[%c8_308, %c0_309, %c0_310] : memref<12x8x128xf32, #tpu.memory_space<vmem>>, vector<1x8x128xf32>
    %374 = vector.shape_cast %373 : vector<1x8x128xf32> to vector<8x128xf32>
    %375 = arith.mulf %374, %372 : vector<8x128xf32>
    %376 = arith.addf %369, %375 : vector<8x128xf32>
    %c9 = arith.constant 9 : index
    %c0_311 = arith.constant 0 : index
    %c0_312 = arith.constant 0 : index
    %c0_313 = arith.constant 0 : index
    %377 = vector.load %arg1[%c9, %c0_311, %c0_312, %c0_313] : memref<12x7x8x128xf32, #tpu.memory_space<vmem>>, vector<1x1x8x128xf32>
    %378 = vector.shape_cast %377 : vector<1x1x8x128xf32> to vector<8x128xf32>
    %c9_314 = arith.constant 9 : index
    %c1_315 = arith.constant 1 : index
    %c0_316 = arith.constant 0 : index
    %c0_317 = arith.constant 0 : index
    %379 = vector.load %arg1[%c9_314, %c1_315, %c0_316, %c0_317] : memref<12x7x8x128xf32, #tpu.memory_space<vmem>>, vector<1x1x8x128xf32>
    %380 = vector.shape_cast %379 : vector<1x1x8x128xf32> to vector<8x128xf32>
    %381 = arith.mulf %9, %380 : vector<8x128xf32>
    %382 = arith.addf %378, %381 : vector<8x128xf32>
    %c9_318 = arith.constant 9 : index
    %c2_319 = arith.constant 2 : index
    %c0_320 = arith.constant 0 : index
    %c0_321 = arith.constant 0 : index
    %383 = vector.load %arg1[%c9_318, %c2_319, %c0_320, %c0_321] : memref<12x7x8x128xf32, #tpu.memory_space<vmem>>, vector<1x1x8x128xf32>
    %384 = vector.shape_cast %383 : vector<1x1x8x128xf32> to vector<8x128xf32>
    %385 = arith.mulf %18, %384 : vector<8x128xf32>
    %386 = arith.addf %382, %385 : vector<8x128xf32>
    %c9_322 = arith.constant 9 : index
    %c3_323 = arith.constant 3 : index
    %c0_324 = arith.constant 0 : index
    %c0_325 = arith.constant 0 : index
    %387 = vector.load %arg1[%c9_322, %c3_323, %c0_324, %c0_325] : memref<12x7x8x128xf32, #tpu.memory_space<vmem>>, vector<1x1x8x128xf32>
    %388 = vector.shape_cast %387 : vector<1x1x8x128xf32> to vector<8x128xf32>
    %389 = arith.mulf %19, %388 : vector<8x128xf32>
    %390 = arith.addf %386, %389 : vector<8x128xf32>
    %c9_326 = arith.constant 9 : index
    %c4_327 = arith.constant 4 : index
    %c0_328 = arith.constant 0 : index
    %c0_329 = arith.constant 0 : index
    %391 = vector.load %arg1[%c9_326, %c4_327, %c0_328, %c0_329] : memref<12x7x8x128xf32, #tpu.memory_space<vmem>>, vector<1x1x8x128xf32>
    %392 = vector.shape_cast %391 : vector<1x1x8x128xf32> to vector<8x128xf32>
    %393 = arith.mulf %20, %392 : vector<8x128xf32>
    %394 = arith.addf %390, %393 : vector<8x128xf32>
    %c9_330 = arith.constant 9 : index
    %c5_331 = arith.constant 5 : index
    %c0_332 = arith.constant 0 : index
    %c0_333 = arith.constant 0 : index
    %395 = vector.load %arg1[%c9_330, %c5_331, %c0_332, %c0_333] : memref<12x7x8x128xf32, #tpu.memory_space<vmem>>, vector<1x1x8x128xf32>
    %396 = vector.shape_cast %395 : vector<1x1x8x128xf32> to vector<8x128xf32>
    %397 = arith.mulf %21, %396 : vector<8x128xf32>
    %398 = arith.addf %394, %397 : vector<8x128xf32>
    %c9_334 = arith.constant 9 : index
    %c6_335 = arith.constant 6 : index
    %c0_336 = arith.constant 0 : index
    %c0_337 = arith.constant 0 : index
    %399 = vector.load %arg1[%c9_334, %c6_335, %c0_336, %c0_337] : memref<12x7x8x128xf32, #tpu.memory_space<vmem>>, vector<1x1x8x128xf32>
    %400 = vector.shape_cast %399 : vector<1x1x8x128xf32> to vector<8x128xf32>
    %401 = arith.mulf %22, %400 : vector<8x128xf32>
    %402 = arith.addf %398, %401 : vector<8x128xf32>
    %403 = math.absf %402 : vector<8x128xf32>
    %404 = arith.mulf %403, %17 : vector<8x128xf32>
    %405 = math.sqrt %404 : vector<8x128xf32>
    %c9_338 = arith.constant 9 : index
    %c0_339 = arith.constant 0 : index
    %c0_340 = arith.constant 0 : index
    %406 = vector.load %arg2[%c9_338, %c0_339, %c0_340] : memref<12x8x128xf32, #tpu.memory_space<vmem>>, vector<1x8x128xf32>
    %407 = vector.shape_cast %406 : vector<1x8x128xf32> to vector<8x128xf32>
    %408 = arith.mulf %407, %405 : vector<8x128xf32>
    %409 = arith.addf %402, %408 : vector<8x128xf32>
    %410 = arith.subf %376, %409 : vector<8x128xf32>
    %c1_341 = arith.constant 1 : index
    %c0_342 = arith.constant 0 : index
    %c0_343 = arith.constant 0 : index
    %411 = vector.load %arg3[%c1_341, %c0_342, %c0_343] : memref<3x128x128xf32, #tpu.memory_space<vmem>>, vector<1x128x128xf32>
    %412 = vector.shape_cast %411 : vector<1x128x128xf32> to vector<128x128xf32>
    %cst_344 = arith.constant dense<0.000000e+00> : vector<8x128xf32>
    %413 = tpu.matmul %410, %412, %cst_344 {dimension_numbers = #tpu.dot_dimension_numbers<[1], [0], [0], [1], [0, 0, 1, 1], [], []>} : vector<8x128xf32>, vector<128x128xf32>, vector<8x128xf32> -> vector<8x128xf32>
    %414 = math.roundeven %413 : vector<8x128xf32>
    %cst_345 = arith.constant -2.048000e+03 : f32
    %cst_346 = arith.constant 2.048000e+03 : f32
    %415 = vector.broadcast %cst_345 : f32 to vector<8x128xf32>
    %416 = arith.maximumf %415, %414 : vector<8x128xf32>
    %417 = vector.broadcast %cst_346 : f32 to vector<8x128xf32>
    %418 = arith.minimumf %417, %416 : vector<8x128xf32>
    %c4_i32_347 = arith.constant 4 : i32
    %419 = tpu.dynamic_rotate %418 by %c4_i32_347 dim 0 : vector<8x128xf32>, i32 -> vector<8x128xf32>
    %420 = arith.addf %418, %419 : vector<8x128xf32>
    %cst_348 = arith.constant 1.95312503E-4 : f32
    %421 = vector.broadcast %cst_348 : f32 to vector<8x128xf32>
    %422 = arith.mulf %420, %421 : vector<8x128xf32>
    %423 = arith.addf %343, %422 : vector<8x128xf32>
    %c10 = arith.constant 10 : index
    %c0_349 = arith.constant 0 : index
    %c0_350 = arith.constant 0 : index
    %c0_351 = arith.constant 0 : index
    %424 = vector.load %arg1[%c10, %c0_349, %c0_350, %c0_351] : memref<12x7x8x128xf32, #tpu.memory_space<vmem>>, vector<1x1x8x128xf32>
    %425 = vector.shape_cast %424 : vector<1x1x8x128xf32> to vector<8x128xf32>
    %c10_352 = arith.constant 10 : index
    %c1_353 = arith.constant 1 : index
    %c0_354 = arith.constant 0 : index
    %c0_355 = arith.constant 0 : index
    %426 = vector.load %arg1[%c10_352, %c1_353, %c0_354, %c0_355] : memref<12x7x8x128xf32, #tpu.memory_space<vmem>>, vector<1x1x8x128xf32>
    %427 = vector.shape_cast %426 : vector<1x1x8x128xf32> to vector<8x128xf32>
    %428 = arith.mulf %9, %427 : vector<8x128xf32>
    %429 = arith.addf %425, %428 : vector<8x128xf32>
    %c10_356 = arith.constant 10 : index
    %c2_357 = arith.constant 2 : index
    %c0_358 = arith.constant 0 : index
    %c0_359 = arith.constant 0 : index
    %430 = vector.load %arg1[%c10_356, %c2_357, %c0_358, %c0_359] : memref<12x7x8x128xf32, #tpu.memory_space<vmem>>, vector<1x1x8x128xf32>
    %431 = vector.shape_cast %430 : vector<1x1x8x128xf32> to vector<8x128xf32>
    %432 = arith.mulf %18, %431 : vector<8x128xf32>
    %433 = arith.addf %429, %432 : vector<8x128xf32>
    %c10_360 = arith.constant 10 : index
    %c3_361 = arith.constant 3 : index
    %c0_362 = arith.constant 0 : index
    %c0_363 = arith.constant 0 : index
    %434 = vector.load %arg1[%c10_360, %c3_361, %c0_362, %c0_363] : memref<12x7x8x128xf32, #tpu.memory_space<vmem>>, vector<1x1x8x128xf32>
    %435 = vector.shape_cast %434 : vector<1x1x8x128xf32> to vector<8x128xf32>
    %436 = arith.mulf %19, %435 : vector<8x128xf32>
    %437 = arith.addf %433, %436 : vector<8x128xf32>
    %c10_364 = arith.constant 10 : index
    %c4_365 = arith.constant 4 : index
    %c0_366 = arith.constant 0 : index
    %c0_367 = arith.constant 0 : index
    %438 = vector.load %arg1[%c10_364, %c4_365, %c0_366, %c0_367] : memref<12x7x8x128xf32, #tpu.memory_space<vmem>>, vector<1x1x8x128xf32>
    %439 = vector.shape_cast %438 : vector<1x1x8x128xf32> to vector<8x128xf32>
    %440 = arith.mulf %20, %439 : vector<8x128xf32>
    %441 = arith.addf %437, %440 : vector<8x128xf32>
    %c10_368 = arith.constant 10 : index
    %c5_369 = arith.constant 5 : index
    %c0_370 = arith.constant 0 : index
    %c0_371 = arith.constant 0 : index
    %442 = vector.load %arg1[%c10_368, %c5_369, %c0_370, %c0_371] : memref<12x7x8x128xf32, #tpu.memory_space<vmem>>, vector<1x1x8x128xf32>
    %443 = vector.shape_cast %442 : vector<1x1x8x128xf32> to vector<8x128xf32>
    %444 = arith.mulf %21, %443 : vector<8x128xf32>
    %445 = arith.addf %441, %444 : vector<8x128xf32>
    %c10_372 = arith.constant 10 : index
    %c6_373 = arith.constant 6 : index
    %c0_374 = arith.constant 0 : index
    %c0_375 = arith.constant 0 : index
    %446 = vector.load %arg1[%c10_372, %c6_373, %c0_374, %c0_375] : memref<12x7x8x128xf32, #tpu.memory_space<vmem>>, vector<1x1x8x128xf32>
    %447 = vector.shape_cast %446 : vector<1x1x8x128xf32> to vector<8x128xf32>
    %448 = arith.mulf %22, %447 : vector<8x128xf32>
    %449 = arith.addf %445, %448 : vector<8x128xf32>
    %450 = math.absf %449 : vector<8x128xf32>
    %451 = arith.mulf %450, %17 : vector<8x128xf32>
    %452 = math.sqrt %451 : vector<8x128xf32>
    %c10_376 = arith.constant 10 : index
    %c0_377 = arith.constant 0 : index
    %c0_378 = arith.constant 0 : index
    %453 = vector.load %arg2[%c10_376, %c0_377, %c0_378] : memref<12x8x128xf32, #tpu.memory_space<vmem>>, vector<1x8x128xf32>
    %454 = vector.shape_cast %453 : vector<1x8x128xf32> to vector<8x128xf32>
    %455 = arith.mulf %454, %452 : vector<8x128xf32>
    %456 = arith.addf %449, %455 : vector<8x128xf32>
    %c11 = arith.constant 11 : index
    %c0_379 = arith.constant 0 : index
    %c0_380 = arith.constant 0 : index
    %c0_381 = arith.constant 0 : index
    %457 = vector.load %arg1[%c11, %c0_379, %c0_380, %c0_381] : memref<12x7x8x128xf32, #tpu.memory_space<vmem>>, vector<1x1x8x128xf32>
    %458 = vector.shape_cast %457 : vector<1x1x8x128xf32> to vector<8x128xf32>
    %c11_382 = arith.constant 11 : index
    %c1_383 = arith.constant 1 : index
    %c0_384 = arith.constant 0 : index
    %c0_385 = arith.constant 0 : index
    %459 = vector.load %arg1[%c11_382, %c1_383, %c0_384, %c0_385] : memref<12x7x8x128xf32, #tpu.memory_space<vmem>>, vector<1x1x8x128xf32>
    %460 = vector.shape_cast %459 : vector<1x1x8x128xf32> to vector<8x128xf32>
    %461 = arith.mulf %9, %460 : vector<8x128xf32>
    %462 = arith.addf %458, %461 : vector<8x128xf32>
    %c11_386 = arith.constant 11 : index
    %c2_387 = arith.constant 2 : index
    %c0_388 = arith.constant 0 : index
    %c0_389 = arith.constant 0 : index
    %463 = vector.load %arg1[%c11_386, %c2_387, %c0_388, %c0_389] : memref<12x7x8x128xf32, #tpu.memory_space<vmem>>, vector<1x1x8x128xf32>
    %464 = vector.shape_cast %463 : vector<1x1x8x128xf32> to vector<8x128xf32>
    %465 = arith.mulf %18, %464 : vector<8x128xf32>
    %466 = arith.addf %462, %465 : vector<8x128xf32>
    %c11_390 = arith.constant 11 : index
    %c3_391 = arith.constant 3 : index
    %c0_392 = arith.constant 0 : index
    %c0_393 = arith.constant 0 : index
    %467 = vector.load %arg1[%c11_390, %c3_391, %c0_392, %c0_393] : memref<12x7x8x128xf32, #tpu.memory_space<vmem>>, vector<1x1x8x128xf32>
    %468 = vector.shape_cast %467 : vector<1x1x8x128xf32> to vector<8x128xf32>
    %469 = arith.mulf %19, %468 : vector<8x128xf32>
    %470 = arith.addf %466, %469 : vector<8x128xf32>
    %c11_394 = arith.constant 11 : index
    %c4_395 = arith.constant 4 : index
    %c0_396 = arith.constant 0 : index
    %c0_397 = arith.constant 0 : index
    %471 = vector.load %arg1[%c11_394, %c4_395, %c0_396, %c0_397] : memref<12x7x8x128xf32, #tpu.memory_space<vmem>>, vector<1x1x8x128xf32>
    %472 = vector.shape_cast %471 : vector<1x1x8x128xf32> to vector<8x128xf32>
    %473 = arith.mulf %20, %472 : vector<8x128xf32>
    %474 = arith.addf %470, %473 : vector<8x128xf32>
    %c11_398 = arith.constant 11 : index
    %c5_399 = arith.constant 5 : index
    %c0_400 = arith.constant 0 : index
    %c0_401 = arith.constant 0 : index
    %475 = vector.load %arg1[%c11_398, %c5_399, %c0_400, %c0_401] : memref<12x7x8x128xf32, #tpu.memory_space<vmem>>, vector<1x1x8x128xf32>
    %476 = vector.shape_cast %475 : vector<1x1x8x128xf32> to vector<8x128xf32>
    %477 = arith.mulf %21, %476 : vector<8x128xf32>
    %478 = arith.addf %474, %477 : vector<8x128xf32>
    %c11_402 = arith.constant 11 : index
    %c6_403 = arith.constant 6 : index
    %c0_404 = arith.constant 0 : index
    %c0_405 = arith.constant 0 : index
    %479 = vector.load %arg1[%c11_402, %c6_403, %c0_404, %c0_405] : memref<12x7x8x128xf32, #tpu.memory_space<vmem>>, vector<1x1x8x128xf32>
    %480 = vector.shape_cast %479 : vector<1x1x8x128xf32> to vector<8x128xf32>
    %481 = arith.mulf %22, %480 : vector<8x128xf32>
    %482 = arith.addf %478, %481 : vector<8x128xf32>
    %483 = math.absf %482 : vector<8x128xf32>
    %484 = arith.mulf %483, %17 : vector<8x128xf32>
    %485 = math.sqrt %484 : vector<8x128xf32>
    %c11_406 = arith.constant 11 : index
    %c0_407 = arith.constant 0 : index
    %c0_408 = arith.constant 0 : index
    %486 = vector.load %arg2[%c11_406, %c0_407, %c0_408] : memref<12x8x128xf32, #tpu.memory_space<vmem>>, vector<1x8x128xf32>
    %487 = vector.shape_cast %486 : vector<1x8x128xf32> to vector<8x128xf32>
    %488 = arith.mulf %487, %485 : vector<8x128xf32>
    %489 = arith.addf %482, %488 : vector<8x128xf32>
    %490 = arith.subf %456, %489 : vector<8x128xf32>
    %c2_409 = arith.constant 2 : index
    %c0_410 = arith.constant 0 : index
    %c0_411 = arith.constant 0 : index
    %491 = vector.load %arg3[%c2_409, %c0_410, %c0_411] : memref<3x128x128xf32, #tpu.memory_space<vmem>>, vector<1x128x128xf32>
    %492 = vector.shape_cast %491 : vector<1x128x128xf32> to vector<128x128xf32>
    %cst_412 = arith.constant dense<0.000000e+00> : vector<8x128xf32>
    %493 = tpu.matmul %490, %492, %cst_412 {dimension_numbers = #tpu.dot_dimension_numbers<[1], [0], [0], [1], [0, 0, 1, 1], [], []>} : vector<8x128xf32>, vector<128x128xf32>, vector<8x128xf32> -> vector<8x128xf32>
    %494 = math.roundeven %493 : vector<8x128xf32>
    %cst_413 = arith.constant -2.048000e+03 : f32
    %cst_414 = arith.constant 2.048000e+03 : f32
    %495 = vector.broadcast %cst_413 : f32 to vector<8x128xf32>
    %496 = arith.maximumf %495, %494 : vector<8x128xf32>
    %497 = vector.broadcast %cst_414 : f32 to vector<8x128xf32>
    %498 = arith.minimumf %497, %496 : vector<8x128xf32>
    %c4_i32_415 = arith.constant 4 : i32
    %499 = tpu.dynamic_rotate %498 by %c4_i32_415 dim 0 : vector<8x128xf32>, i32 -> vector<8x128xf32>
    %500 = arith.addf %498, %499 : vector<8x128xf32>
    %cst_416 = arith.constant 1.95312503E-4 : f32
    %501 = vector.broadcast %cst_416 : f32 to vector<8x128xf32>
    %502 = arith.mulf %500, %501 : vector<8x128xf32>
    %503 = arith.addf %423, %502 : vector<8x128xf32>
    %c0_417 = arith.constant 0 : index
    %c0_418 = arith.constant 0 : index
    %504 = vector.load %arg5[%c0_417, %c0_418] : memref<8x128xf32, #tpu.memory_space<vmem>>, vector<8x128xf32>
    tpu.vector_store %arg5[%c0_417, %c0_418], %503 {strides = array<i32>} : memref<8x128xf32, #tpu.memory_space<vmem>>, vector<8x128xf32>,
    return
  }
}

</mosaic_0001>

<bundles_post_ra>
// kernel: tiled_memristor_linear.1
= control target key start
LH: loop header
LB: loop body
LE: loop exit
PB: predicated region body
PF: predicated region fallthrough
CT: control target
= control target key end

     0   :  { %10 = vsyncpa [#allocation3], 0  ;;  %s1476_s0 = inlined_call_operand.vmem [shape: f32[8,128], index: 0, kind: input, shape index: {}]   ;;  %s1477_s1 = inlined_call_operand.hbm [shape: f32[12,7,8,128], index: 1, kind: input, shape index: {}]   ;;  %s1478_s2 = inlined_call_operand.vmem [shape: f32[12,8,128], index: 2, kind: input, shape index: {}]   ;;  %s1479_s3 = inlined_call_operand.hbm [shape: f32[3,128,128], index: 3, kind: input, shape index: {}]   ;;  %s1480_s4 = inlined_call_operand.vmem [shape: f32[8,128], index: 4, kind: input, shape index: {}]   ;;  %s1481_s5 = inlined_call_operand.vmem [shape: f32[8,128], index: 5, kind: output, shape index: {}]  }
   0x1   :  { %s18_s20 = sshll.u32 %s1477_s1, 4  ;;  %s19_s20 = int_to_ptr.hbm [resolvable:$true] %s18_s20 }
   0x2   :  { %11 = vsyncpa [#allocation5], 0  ;;  %s976_s21 = smov [#allocation2]   ;;  %s33_s25 = sshll.u32 %s1479_s3, 4  ;;  %s34_s25 = int_to_ptr.hbm [resolvable:$true] %s33_s25 }
   0x3   :  { %s20_s22 = sshll.u32 %s976_s21, 4  ;;  %s977_s26 = smov 128   ;;  %s21_s22 = int_to_ptr.vmem [resolvable:$true] %s20_s22 }
   0x4   :  { %s978_s27 = smov 8   ;;  %s979_s28 = smov [#allocation4]  }
   0x5   :  { %26 = dma.hbm_to_vmem [thread:$0]  %s19_s20, 10752, %s21_s22, [#allocation3], %s977_s26, %s977_s26, %s978_s27  }
   0x6   :  { %s35_s29 = sshll.u32 %s979_s28, 4  ;;  %s36_s29 = int_to_ptr.vmem [resolvable:$true] %s35_s29 }
   0x7   :  { %41 = dma.hbm_to_vmem [thread:$0]  %s34_s25, 6144, %s36_s29, [#allocation5], %s977_s26, %s977_s26, %s978_s27  }
   0x8   :  { %972 = dma.done.wait [#allocation3], 10752  }
   0x9   :  { %973 = vsyncadd [#allocation3], 4294956544 }
   0xa   :  { %974 = dma.done.wait [#allocation5], 6144  }
   0xb   :  { %975 = vsyncadd [#allocation5], 4294961152  ;;  %v171_v0 = vld [vmem:[#allocation4 + $0x78] sm:$0xff]  ;;  %v170_v2 = vld [vmem:[#allocation4 + $0x70] sm:$0xff] }
   0xc   :  { %v1016_v1 = vld [vmem:[#allocation4 + $0xf8] sm:$0xff]  ;;  %172 = vmatpush.msra.mxu0 %v171_v0  ;;  %v1019_v3 = vld [vmem:[#allocation4 + $0xf0] sm:$0xff]  ;;  %v169_v4 = vld [vmem:[#allocation4 + $0x68] sm:$0xff]  ;;  %554 = vmatpush.msra.mxu3 %v171_v0 }
   0xd   :  { %305 = vmatpush.msra.mxu1 %v1016_v1  ;;  %v1021_v5 = vld [vmem:[#allocation4 + $0xe8] sm:$0xff]  ;;  %v168_v6 = vld [vmem:[#allocation4 + $0x60] sm:$0xff]  ;;  %v167_v8 = vld [vmem:[#allocation4 + $0x58] sm:$0xff] }
   0xe   :  { %173 = vmatpush.msra.mxu0 %v170_v2  ;;  %v1024_v7 = vld [vmem:[#allocation4 + $0xe0] sm:$0xff]  ;;  %555 = vmatpush.msra.mxu3 %v170_v2  ;;  %v1027_v9 = vld [vmem:[#allocation4 + $0xd8] sm:$0xff]  ;;  %v166_v10 = vld [vmem:[#allocation4 + $0x50] sm:$0xff] }
   0xf   :  { %306 = vmatpush.msra.mxu1 %v1019_v3  ;;  %v1030_v11 = vld [vmem:[#allocation4 + $0xd0] sm:$0xff]  ;;  %v1032_v12 = vld [vmem:[#allocation4 + $0x178] sm:$0xff]  ;;  %v165_v14 = vld [vmem:[#allocation4 + $0x48] sm:$0xff] }
  0x10   :  { %174 = vmatpush.msra.mxu0 %v169_v4  ;;  %556 = vmatpush.msra.mxu3 %v169_v4  ;;  %v1035_v13 = vld [vmem:[#allocation4 + $0x170] sm:$0xff]  ;;  %v1037_v15 = vld [vmem:[#allocation4 + $0xc8] sm:$0xff]  ;;  %v164_v17 = vld [vmem:[#allocation4 + $0x40] sm:$0xff] }
  0x11   :  { %307 = vmatpush.msra.mxu1 %v1021_v5  ;;  %438 = vmatpush.msra.mxu2 %v1032_v12  ;;  %v1041_v16 = vld [vmem:[#allocation4 + $0x168] sm:$0xff]  ;;  %v1043_v18 = vld [vmem:[#allocation4 + $0xc0] sm:$0xff]  ;;  %v163_v20 = vld [vmem:[#allocation4 + $0x38] sm:$0xff] }
  0x12   :  { %175 = vmatpush.msra.mxu0 %v168_v6  ;;  %557 = vmatpush.msra.mxu3 %v168_v6  ;;  %v1047_v19 = vld [vmem:[#allocation4 + $0x160] sm:$0xff]  ;;  %v1049_v21 = vld [vmem:[#allocation4 + $0xb8] sm:$0xff]  ;;  %v162_v24 = vld [vmem:[#allocation4 + $0x30] sm:$0xff] }
  0x13   :  { %308 = vmatpush.msra.mxu1 %v1024_v7  ;;  %439 = vmatpush.msra.mxu2 %v1035_v13  ;;  %v1053_v22 = vld [vmem:[#allocation4 + $0x158] sm:$0xff]  ;;  %v52_v23 = vld [vmem:[%s1476_s0] sm:$0xff]  ;;  %v1058_v25 = vld [vmem:[#allocation4 + $0xb0] sm:$0xff] }
  0x14   :  { %176 = vmatpush.msra.mxu0 %v167_v8  ;;  %558 = vmatpush.msra.mxu3 %v167_v8  ;;  %v53_v26 = vmul.f32 102.4, %v52_v23  ;;  %v1062_v27 = vld [vmem:[#allocation4 + $0x150] sm:$0xff]  ;;  %v161_v28 = vld [vmem:[#allocation4 + $0x28] sm:$0xff]  ;;  %v160_v33 = vld [vmem:[#allocation4 + $0x20] sm:$0xff] }
  0x15   :  { %309 = vmatpush.msra.mxu1 %v1027_v9  ;;  %440 = vmatpush.msra.mxu2 %v1041_v16  ;;  %v1064_v29 = vld [vmem:[#allocation4 + $0xa8] sm:$0xff]  ;;  %v1070_v34 = vld [vmem:[#allocation4 + $0xa0] sm:$0xff]  ;;  %v159_v38 = vld [vmem:[#allocation4 + $0x18] sm:$0xff] }
  0x16   :  { %177 = vmatpush.msra.mxu0 %v166_v10  ;;  %559 = vmatpush.msra.mxu3 %v166_v10  ;;  %v840_v30 = vcvt.f32.s32 %v53_v26  ;;  %v1068_v31 = vld [vmem:[#allocation4 + $0x148] sm:$0xff]  ;;  %v838_v32 = vand.u32 2147483647, %v53_v26  ;;  %v843_v36 = vand.u32 2147483648, %v53_v26  ;;  %v1074_v37 = vld [vmem:[#allocation4 + $0x140] sm:$0xff]  ;;  %v1076_v39 = vld [vmem:[#allocation4 + $0x98] sm:$0xff] }
  0x17   :  { %310 = vmatpush.msra.mxu1 %v1030_v11  ;;  %441 = vmatpush.msra.mxu2 %v1047_v19  ;;  %v1080_v41 = vld [vmem:[#allocation4 + $0x138] sm:$0xff]  ;;  %v158_v43 = vld [vmem:[#allocation4 + $0x10] sm:$0xff]  ;;  %v157_v47 = vld [vmem:[#allocation4 + $0x8] sm:$0xff] }
  0x18   :  { %178 = vmatpush.msra.mxu0 %v165_v14  ;;  %560 = vmatpush.msra.mxu3 %v165_v14  ;;  %v841_v35 = vcvt.s32.f32 %v840_v30  ;;  %vm1082_vm0 = vcmp.lt.f32.partialorder %v838_v32, 8388608.0  ;;  %v1086_v44 = vld [vmem:[#allocation4 + $0x90] sm:$0xff]  ;;  %v1092_v48 = vld [vmem:[#allocation4 + $0x88] sm:$0xff]  ;;  %v156_v50 = vld [vmem:[#allocation4] sm:$0xff] }
  0x19   :  { %311 = vmatpush.msra.mxu1 %v1037_v15  ;;  %442 = vmatpush.msra.mxu2 %v1053_v22  ;;  %v1090_v46 = vld [vmem:[#allocation4 + $0x130] sm:$0xff]  ;;  %v1098_v51 = vld [vmem:[#allocation4 + $0x128] sm:$0xff]  ;;  %v1100_v53 = vld [vmem:[#allocation4 + $0x80] sm:$0xff] }
  0x1a   :  { %179 = vmatpush.msra.mxu0 %v164_v17  ;;  %561 = vmatpush.msra.mxu3 %v164_v17  ;;  %v842_v40 = vand.u32 2147483647, %v841_v35  ;;  %v71_v54 = vld [vmem:[#allocation2 + $0x8] sm:$0xff]  ;;  %v114_v55 = vld [vmem:[#allocation2 + $0x40] sm:$0xff]  ;;  %v202_v57 = vld [vmem:[#allocation2 + $0x78] sm:$0xff] }
  0x1b   :  { %312 = vmatpush.msra.mxu1 %v1043_v18  ;;  %443 = vmatpush.msra.mxu2 %v1062_v27  ;;  %v246_v58 = vld [vmem:[#allocation2 + $0xb0] sm:$0xff]  ;;  %v335_v59 = vld [vmem:[#allocation2 + $0xe8] sm:$0xff]  ;;  %v1107_v60 = vld [vmem:[#allocation4 + $0x120] sm:$0xff] }
  0x1c   :  { %180 = vmatpush.msra.mxu0 %v163_v20  ;;  %562 = vmatpush.msra.mxu3 %v163_v20  ;;  %v844_v45 = vor.u32 %v843_v36, %v842_v40  ;;  %v69_v61 = vld [vmem:[#allocation2] sm:$0xff]  ;;  %v75_v62 = vld [vmem:[#allocation2 + $0x10] sm:$0xff]  ;;  %v112_v4 = vld [vmem:[#allocation2 + $0x38] sm:$0xff] }
  0x1d   :  { %313 = vmatpush.msra.mxu1 %v1049_v21  ;;  %444 = vmatpush.msra.mxu2 %v1068_v31  ;;  %v118_v8 = vld [vmem:[#allocation2 + $0x48] sm:$0xff]  ;;  %v200_v10 = vld [vmem:[#allocation2 + $0x70] sm:$0xff]  ;;  %v1119_v14 = vld [vmem:[#allocation4 + $0x118] sm:$0xff] }
  0x1e   :  { %181 = vmatpush.msra.mxu0 %v162_v24  ;;  %563 = vmatpush.msra.mxu3 %v162_v24  ;;  %v845_v49 = vsel %vm1082_vm0, %v844_v45, %v53_v26  ;;  %v79_v17 = vld [vmem:[#allocation2 + $0x18] sm:$0xff]  ;;  %v122_v30 = vld [vmem:[#allocation2 + $0x50] sm:$0xff]  ;;  %v206_v32 = vld [vmem:[#allocation2 + $0x80] sm:$0xff] }
  0x1f   :  { %314 = vmatpush.msra.mxu1 %v1058_v25  ;;  %445 = vmatpush.msra.mxu2 %v1074_v37  ;;  %v820_v52 = vclamps-f32 %v845_v49, 128.0  ;;  %v83_v35 = vld [vmem:[#allocation2 + $0x20] sm:$0xff]  ;;  %v126_v40 = vld [vmem:[#allocation2 + $0x58] sm:$0xff]  ;;  %v87_v49 = vld [vmem:[#allocation2 + $0x28] sm:$0xff] }
  0x20   :  { %182 = vmatpush.msra.mxu0 %v161_v28  ;;  %564 = vmatpush.msra.mxu3 %v161_v28 }
  0x21   :  { %315 = vmatpush.msra.mxu1 %v1064_v29  ;;  %446 = vmatpush.msra.mxu2 %v1080_v41  ;;  %v1104_v56 = vmul.f32 0.0046875, %v820_v52 }
  0x22   :  { %183 = vmatpush.msra.mxu0 %v160_v33  ;;  %565 = vmatpush.msra.mxu3 %v160_v33  ;;  %v1136_v33 = vld [vmem:[#allocation4 + $0x110] sm:$0xff] }
  0x23   :  { %316 = vmatpush.msra.mxu1 %v1070_v34  ;;  %447 = vmatpush.msra.mxu2 %v1090_v46  ;;  %v58_v63 = vand.u32 2147483647, %v1104_v56  ;;  %v1113_v0 = vmul.f32 %v1104_v56, %v1104_v56  ;;  %v72_v2 = vmul.f32 %v71_v54, %v1104_v56  ;;  %v115_v6 = vmul.f32 %v114_v55, %v1104_v56  ;;  %v130_v54 = vld [vmem:[#allocation2 + $0x60] sm:$0xff] }
  0x24   :  { %184 = vmatpush.msra.mxu0 %v159_v38  ;;  %566 = vmatpush.msra.mxu3 %v159_v38  ;;  %v203_v20 = vmul.f32 %v202_v57, %v1104_v56  ;;  %v1123_v23 = vmul.f32 %v246_v58, %v1104_v56  ;;  %v1126_v24 = vmul.f32 %v335_v59, %v1104_v56  ;;  %v91_v59 = vld [vmem:[#allocation2 + $0x30] sm:$0xff] }
  0x25   :  { %317 = vmatpush.msra.mxu1 %v1076_v39  ;;  %448 = vmatpush.msra.mxu2 %v1098_v51  ;;  %v59_v26 = vadd.f32 1e-12, %v58_v63  ;;  %v76_v28 = vmul.f32 %v75_v62, %v1113_v0  ;;  %v116_v36 = vadd.f32 %v115_v6, %v112_v4  ;;  %v119_v38 = vmul.f32 %v118_v8, %v1113_v0  ;;  %v1160_v62 = vld [vmem:[#allocation4 + $0x100] sm:$0xff]  ;;  %v218_v8 = vld [vmem:[#allocation2 + $0x98] sm:$0xff] }
  0x26   :  { %185 = vmatpush.msra.mxu0 %v158_v43  ;;  %567 = vmatpush.msra.mxu3 %v158_v43  ;;  %v204_v42 = vadd.f32 %v203_v20, %v200_v10  ;;  %v207_v55 = vmul.f32 %v206_v32, %v1113_v0  ;;  %v250_v32 = vld [vmem:[#allocation2 + $0xb8] sm:$0xff] }
  0x27   :  { %318 = vmatpush.msra.mxu1 %v1086_v44  ;;  %449 = vmatpush.msra.mxu2 %v1107_v60  ;;  %898 = vrcp.f32 %v59_v26 }
  0x28   :  { %186 = vmatpush.msra.mxu0 %v157_v47  ;;  %568 = vmatpush.msra.mxu3 %v157_v47  ;;  %v210_v47 = vld [vmem:[#allocation2 + $0x88] sm:$0xff]  ;;  %v208_v4 = vadd.f32 %v207_v55, %v204_v42  ;;  %v333_v55 = vld [vmem:[#allocation2 + $0xe0] sm:$0xff] }
  0x29   :  { %319 = vmatpush.msra.mxu1 %v1092_v48  ;;  %450 = vmatpush.msra.mxu2 %v1119_v14 }
  0x2a   :  { %187 = vmatpush.msra.mxu0 %v156_v50  ;;  %569 = vmatpush.msra.mxu3 %v156_v50  ;;  %v120_v50 = vadd.f32 %v119_v38, %v116_v36 }
  0x2b   :  { %320 = vmatpush.msra.mxu1 %v1100_v53  ;;  %451 = vmatpush.msra.mxu2 %v1136_v33 }
  0x2c   :  { %670 = vmatpush.msrb.mxu0 %v1016_v1  ;;  %v1131_v1 = vmul.f32 %v1113_v0, %v1104_v56 }
  0x2d   :  { %786 = vmatpush.msrb.mxu1 %v1032_v12  ;;  %v73_v12 = vadd.f32 %v72_v2, %v69_v61  ;;  %v214_v61 = vld [vmem:[#allocation2 + $0x90] sm:$0xff]  ;;  %v134_v2 = vld [vmem:[#allocation2 + $0x68] sm:$0xff]  ;;  %v899_v36 = vpop.eup %898 }
  0x2e   :  { %671 = vmatpush.msrb.mxu0 %v1019_v3  ;;  %v1142_v43 = vmul.f32 %v1131_v1, %v1104_v56  ;;  %v80_v3 = vmul.f32 %v79_v17, %v1131_v1  ;;  %v123_v52 = vmul.f32 %v122_v30, %v1131_v1  ;;  %v211_v6 = vmul.f32 %v210_v47, %v1131_v1  ;;  %v244_v30 = vld [vmem:[#allocation2 + $0xa8] sm:$0xff] }
  0x2f   :  { %787 = vmatpush.msrb.mxu1 %v1035_v13  ;;  %v77_v45 = vadd.f32 %v76_v28, %v73_v12  ;;  %v1147_v13 = vld [vmem:[#allocation4 + $0x108] sm:$0xff] }
  0x30   :  { %672 = vmatpush.msrb.mxu0 %v1021_v5  ;;  %v1154_v57 = vmul.f32 %v1142_v43, %v1104_v56  ;;  %v84_v5 = vmul.f32 %v83_v35, %v1142_v43  ;;  %v124_v63 = vadd.f32 %v123_v52, %v120_v50  ;;  %452 = vmatpush.msra.mxu2 %v1147_v13  ;;  %v254_v35 = vld [vmem:[#allocation2 + $0xc0] sm:$0xff] }
  0x31   :  { %788 = vmatpush.msrb.mxu1 %v1041_v16  ;;  %v81_v58 = vadd.f32 %v80_v3, %v77_v45  ;;  %v127_v16 = vmul.f32 %v126_v40, %v1142_v43  ;;  %v212_v12 = vadd.f32 %v211_v6, %v208_v4  ;;  %v215_v28 = vmul.f32 %v214_v61, %v1142_v43 }
  0x32   :  { %673 = vmatpush.msrb.mxu0 %v1024_v7  ;;  %v1166_v10 = vmul.f32 %v1154_v57, %v1104_v56  ;;  %v88_v20 = vmul.f32 %v87_v49, %v1154_v57  ;;  %v131_v7 = vmul.f32 %v130_v54, %v1154_v57  ;;  %453 = vmatpush.msra.mxu2 %v1160_v62 }
  0x33   :  { %789 = vmatpush.msrb.mxu1 %v1047_v19  ;;  %v85_v17 = vadd.f32 %v84_v5, %v81_v58  ;;  %v222_v19 = vld [vmem:[#allocation2 + $0xa0] sm:$0xff]  ;;  %v128_v26 = vadd.f32 %v127_v16, %v124_v63  ;;  %v219_v45 = vmul.f32 %v218_v8, %v1154_v57  ;;  %v216_v3 = vadd.f32 %v215_v28, %v212_v12  ;;  %v339_v58 = vld [vmem:[#allocation2 + $0xf0] sm:$0xff]  ;;  %v343_v16 = vld [vmem:[#allocation2 + $0xf8] sm:$0xff] }
  0x34   :  { %674 = vmatpush.msrb.mxu0 %v1027_v9  ;;  %v92_v40 = vmul.f32 %v91_v59, %v1166_v10  ;;  %v135_v42 = vmul.f32 %v134_v2, %v1166_v10  ;;  %v61_v9 = vmul.f32 1.6567788e-28, %v899_v36  ;;  %v223_v47 = vmul.f32 %v222_v19, %v1166_v10  ;;  %v258_v59 = vld [vmem:[#allocation2 + $0xc8] sm:$0xff]  ;;  %v379_v12 = vld [vmem:[#allocation2 + $0x120] sm:$0xff] }
  0x35   :  { %790 = vmatpush.msrb.mxu1 %v1053_v22  ;;  %v89_v38 = vadd.f32 %v88_v20, %v85_v17  ;;  %v132_v22 = vadd.f32 %v131_v7, %v128_v26  ;;  %v248_v50 = vadd.f32 %v1123_v23, %v244_v30  ;;  %v251_v52 = vmul.f32 %v250_v32, %v1113_v0  ;;  %v262_v17 = vld [vmem:[#allocation2 + $0xd0] sm:$0xff]  ;;  %v266_v7 = vld [vmem:[#allocation2 + $0xd8] sm:$0xff]  ;;  %v351_v26 = vld [vmem:[#allocation2 + $0x108] sm:$0xff] }
  0x36   :  { %675 = vmatpush.msrb.mxu0 %v1030_v11  ;;  %v255_v54 = vmul.f32 %v254_v35, %v1131_v1  ;;  %v1187_v11 = vadd.f32 5.4365636e-08, %v61_v9  ;;  %v220_v5 = vadd.f32 %v219_v45, %v216_v3  ;;  %v259_v8 = vmul.f32 %v258_v59, %v1142_v43  ;;  %v383_v28 = vld [vmem:[#allocation2 + $0x128] sm:$0xff]  ;;  %v355_v30 = vld [vmem:[#allocation2 + $0x110] sm:$0xff]  ;;  %v391_v9 = vld [vmem:[#allocation2 + $0x138] sm:$0xff] }
  0x37   :  { %791 = vmatpush.msrb.mxu1 %v1062_v27  ;;  %v1180_v49 = vadd.f32 %v92_v40, %v89_v38  ;;  %v1189_v27 = vadd.f32 %v135_v42, %v132_v22  ;;  %v252_v23 = vadd.f32 %v251_v52, %v248_v50  ;;  %v344_v20 = vmul.f32 %v343_v16, %v1131_v1  ;;  %v387_v32 = vld [vmem:[#allocation2 + $0x130] sm:$0xff]  ;;  %v377_v42 = vld [vmem:[#allocation2 + $0x118] sm:$0xff] }
  0x38   :  { %676 = vmatpush.msrb.mxu0 %v1037_v15  ;;  %v1195_v2 = vadd.f32 %v223_v47, %v220_v5  ;;  %v337_v15 = vadd.f32 %v1126_v24, %v333_v55  ;;  %v267_v38 = vmul.f32 %v266_v7, %v1166_v10  ;;  %v384_v45 = vmul.f32 %v383_v28, %v1113_v0  ;;  %v468_v22 = vld [vmem:[#allocation2 + $0x158] sm:$0xff]  ;;  %v466_v52 = vld [vmem:[#allocation2 + $0x150] sm:$0xff]  ;;  %v476_v55 = vld [vmem:[#allocation2 + $0x168] sm:$0xff] }
  0x39   :  { %792 = vmatpush.msrb.mxu1 %v1068_v31  ;;  %v94_v61 = vand.u32 2147483647, %v1180_v49  ;;  %v137_v63 = vand.u32 2147483647, %v1189_v27  ;;  %v340_v31 = vmul.f32 %v339_v58, %v1113_v0  ;;  %v256_v6 = vadd.f32 %v255_v54, %v252_v23  ;;  %v472_v54 = vld [vmem:[#allocation2 + $0x160] sm:$0xff]  ;;  %v399_v28 = vld [vmem:[#allocation2 + $0x148] sm:$0xff] }
  0x3a   :  { %677 = vmatpush.msrb.mxu0 %v1043_v18  ;;  %v347_v18 = vld [vmem:[#allocation2 + $0x100] sm:$0xff]  ;;  %v225_v24 = vand.u32 2147483647, %v1195_v2  ;;  %v356_v3 = vmul.f32 %v355_v30, %v1166_v10  ;;  %v388_v47 = vmul.f32 %v387_v32, %v1131_v1  ;;  %v392_v59 = vmul.f32 %v391_v9, %v1142_v43 }
  0x3b   :  { %793 = vmatpush.msrb.mxu1 %v1074_v37  ;;  %v1200_v4 = vmul.f32 %v94_v61, %v1187_v11  ;;  %v1207_v37 = vmul.f32 %v137_v63, %v1187_v11  ;;  %v341_v19 = vadd.f32 %v340_v31, %v337_v15  ;;  %v260_v36 = vadd.f32 %v259_v8, %v256_v6  ;;  %v395_v15 = vld [vmem:[#allocation2 + $0x140] sm:$0xff]  ;;  %v480_v31 = vld [vmem:[#allocation2 + $0x170] sm:$0xff] }
  0x3c   :  { %678 = vmatpush.msrb.mxu0 %v1049_v21  ;;  %v263_v21 = vmul.f32 %v262_v17, %v1154_v57  ;;  %v1217_v35 = vmul.f32 %v225_v24, %v1187_v11  ;;  %v469_v16 = vmul.f32 %v468_v22, %v1104_v56  ;;  %v473_v17 = vmul.f32 %v472_v54, %v1113_v0  ;;  %v516_v54 = vld [vmem:[#allocation2 + $0x198] sm:$0xff] }
  0x3d   :  { %794 = vmatpush.msrb.mxu1 %v1080_v41  ;;  %900 = vrsqrt.f32 %v1200_v4  ;;  %v348_v41 = vmul.f32 %v347_v18, %v1142_v43  ;;  %v345_v40 = vadd.f32 %v344_v20, %v341_v19  ;;  %v106_v5 = vand.u32 2147483648, %v1200_v4 }
  0x3e   :  { %679 = vmatpush.msrb.mxu0 %v1058_v25  ;;  %902 = vrsqrt.f32 %v1207_v37  ;;  %v352_v25 = vmul.f32 %v351_v26, %v1154_v57  ;;  %vm103_vm1 = vcmp.eq.f32.partialorder %v1200_v4, inf  ;;  %v470_v8 = vadd.f32 %v469_v16, %v466_v52 }
  0x3f   :  { %795 = vmatpush.msrb.mxu1 %v1090_v46  ;;  %v380_v46 = vmul.f32 %v379_v12, %v1104_v56  ;;  %904 = vrsqrt.f32 %v1217_v35  ;;  %v477_v20 = vmul.f32 %v476_v55, %v1131_v1  ;;  %vm105_vm2 = vcmp.eq.f32.partialorder %v1200_v4, 0.0 }
  0x40   :  { %680 = vmatpush.msrb.mxu0 %v1064_v29  ;;  %v264_v29 = vadd.f32 %v263_v21, %v260_v36  ;;  %vm146_vm3 = vcmp.eq.f32.partialorder %v1207_v37, inf  ;;  %v396_v12 = vmul.f32 %v395_v15, %v1154_v57  ;;  %v474_v21 = vadd.f32 %v473_v17, %v470_v8  ;;  %v510_v17 = vld [vmem:[#allocation2 + $0x188] sm:$0xff] }
  0x41   :  { %796 = vmatpush.msrb.mxu1 %v1098_v51  ;;  %v349_v51 = vadd.f32 %v348_v41, %v345_v40  ;;  %v381_v50 = vadd.f32 %v380_v46, %v377_v42  ;;  %vm148_vm4 = vcmp.eq.f32.partialorder %v1207_v37, 0.0  ;;  %v400_v46 = vmul.f32 %v399_v28, %v1166_v10 }
  0x42   :  { %681 = vmatpush.msrb.mxu0 %v1070_v34  ;;  %v1234_v63 = vadd.f32 %v267_v38, %v264_v29  ;;  %v484_v38 = vld [vmem:[#allocation2 + $0x178] sm:$0xff]  ;;  %v478_v42 = vadd.f32 %v477_v20, %v474_v21  ;;  %v149_v22 = vand.u32 2147483648, %v1207_v37  ;;  %vm234_vm5 = vcmp.eq.f32.partialorder %v1217_v35, inf }
  0x43   :  { %797 = vmatpush.msrb.mxu1 %v1107_v60  ;;  %v901_v58 = vpop.eup %900  ;;  %v353_v34 = vadd.f32 %v352_v25, %v349_v51  ;;  %v385_v60 = vadd.f32 %v384_v45, %v381_v50  ;;  %v488_v45 = vld [vmem:[#allocation2 + $0x180] sm:$0xff]  ;;  %v512_v50 = vld [vmem:[#allocation2 + $0x190] sm:$0xff]  ;;  %vm236_vm6 = vcmp.eq.f32.partialorder %v1217_v35, 0.0  ;;  %v517_v20 = vmul.f32 %v516_v54, %v1113_v0 }
  0x44   :  { %v903_v61 = vpop.eup %902  ;;  %v97_v23 = vmul.f32 %v901_v58, %v1200_v4  ;;  %682 = vmatpush.msrb.mxu0 %v1076_v39  ;;  %v269_v24 = vand.u32 2147483647, %v1234_v63 }
  0x45   :  { %v140_v6 = vmul.f32 %v903_v61, %v1207_v37  ;;  %798 = vmatpush.msrb.mxu1 %v1119_v14  ;;  %v1245_v7 = vadd.f32 %v356_v3, %v353_v34  ;;  %v389_v39 = vadd.f32 %v388_v47, %v385_v60  ;;  %v905_v19 = vpop.eup %904  ;;  %v481_v14 = vmul.f32 %v480_v31, %v1142_v43  ;;  %v821_v31 = vld [vmem:[%s1478_s2 + $0x8] sm:$0xff] }
  0x46   :  { %v98_v18 = vmul.f32 %v901_v58, %v97_v23  ;;  %683 = vmatpush.msrb.mxu0 %v1086_v44  ;;  %v228_v30 = vmul.f32 %v905_v19, %v1217_v35  ;;  %v1253_v32 = vmul.f32 %v269_v24, %v1187_v11  ;;  %v485_v3 = vmul.f32 %v484_v38, %v1154_v57  ;;  %v520_v38 = vld [vmem:[#allocation2 + $0x1a0] sm:$0xff] }
  0x47   :  { %v141_v26 = vmul.f32 %v903_v61, %v140_v6  ;;  %799 = vmatpush.msrb.mxu1 %v1136_v33  ;;  %v358_v36 = vand.u32 2147483647, %v1245_v7  ;;  %v393_v40 = vadd.f32 %v392_v59, %v389_v39  ;;  %v482_v51 = vadd.f32 %v481_v14, %v478_v42  ;;  %v823_v14 = vld [vmem:[%s1478_s2 + $0x10] sm:$0xff] }
  0x48   :  { %v99_v41 = vmul.f32 0.5, %v98_v18  ;;  %684 = vmatpush.msrb.mxu0 %v1092_v48  ;;  %v229_v33 = vmul.f32 %v905_v19, %v228_v30  ;;  %906 = vrsqrt.f32 %v1253_v32  ;;  %v513_v34 = vmul.f32 %v512_v50, %v1104_v56  ;;  %v584_v50 = vld [vmem:[#allocation2 + $0x1c8] sm:$0xff] }
  0x49   :  { %v142_v44 = vmul.f32 0.5, %v141_v26  ;;  %800 = vmatpush.msrb.mxu1 %v1147_v13  ;;  %v1264_v48 = vmul.f32 %v358_v36, %v1187_v11  ;;  %v397_v29 = vadd.f32 %v396_v12, %v393_v40  ;;  %v486_v23 = vadd.f32 %v485_v3, %v482_v51 }
  0x4a   :  { %v100_v25 = vsub.f32 1.5, %v99_v41  ;;  %685 = vmatpush.msrb.mxu0 %v1100_v53  ;;  %v230_v47 = vmul.f32 0.5, %v229_v33  ;;  %v489_v53 = vmul.f32 %v488_v45, %v1166_v10  ;;  %vm278_vm7 = vcmp.eq.f32.partialorder %v1253_v32, inf }
  0x4b   :  { %v143_v9 = vsub.f32 1.5, %v142_v44  ;;  %801 = vmatpush.msrb.mxu1 %v1160_v62  ;;  %908 = vrsqrt.f32 %v1264_v48  ;;  %v1273_v16 = vadd.f32 %v400_v46, %v397_v29  ;;  %v108_v62 = vld [vmem:[%s1478_s2] sm:$0xff]  ;;  %v514_v36 = vadd.f32 %v513_v34, %v510_v17  ;;  %v524_v46 = vld [vmem:[#allocation2 + $0x1a8] sm:$0xff] }
  0x4c   :  { %v101_v13 = vmul.f32 %v901_v58, %v100_v25  ;;  %v231_v59 = vsub.f32 1.5, %v230_v47  ;;  %v1297_v26 = vadd.f32 %v489_v53, %v486_v23  ;;  %vm280_vm8 = vcmp.eq.f32.partialorder %v1253_v32, 0.0 }
  0x4d   :  { %v144_v52 = vmul.f32 %v903_v61, %v143_v9  ;;  %v237_v61 = vand.u32 2147483648, %v1217_v35  ;;  %v402_v8 = vand.u32 2147483647, %v1273_v16  ;;  %v518_v29 = vadd.f32 %v517_v20, %v514_v36  ;;  %v632_v36 = vld [vmem:[#allocation2 + $0x208] sm:$0xff] }
  0x4e   :  { %v102_v55 = vmul.f32 %v101_v13, %v1200_v4  ;;  %v907_v60 = vpop.eup %906  ;;  %v232_v6 = vmul.f32 %v905_v19, %v231_v59  ;;  %v491_v30 = vand.u32 2147483647, %v1297_v26  ;;  %vm367_vm9 = vcmp.eq.f32.partialorder %v1264_v48, inf  ;;  %v532_v59 = vld [vmem:[#allocation2 + $0x1b8] sm:$0xff] }
  0x4f   :  { %v145_v58 = vmul.f32 %v144_v52, %v1207_v37  ;;  %v272_v39 = vmul.f32 %v907_v60, %v1253_v32  ;;  %v1304_v21 = vmul.f32 %v402_v8, %v1187_v11  ;;  %vm369_vm10 = vcmp.eq.f32.partialorder %v1264_v48, 0.0  ;;  %v588_v52 = vld [vmem:[#allocation2 + $0x1d0] sm:$0xff] }
  0x50   :  { %v104_v15 = vsel %vm103_vm1, %v1200_v4, %v102_v55  ;;  %v233_v28 = vmul.f32 %v232_v6, %v1217_v35  ;;  %v1323_v47 = vmul.f32 %v491_v30, %v1187_v11  ;;  %v370_v54 = vand.u32 2147483648, %v1264_v48  ;;  %v596_v6 = vld [vmem:[#allocation2 + $0x1e0] sm:$0xff] }
  0x51   :  { %v107_v18 = vsel %vm105_vm2, %v106_v5, %v104_v15  ;;  %v147_v24 = vsel %vm146_vm3, %v1207_v37, %v145_v58  ;;  %v909_v4 = vpop.eup %908  ;;  %v273_v41 = vmul.f32 %v907_v60, %v272_v39  ;;  %910 = vrsqrt.f32 %v1304_v21 }
  0x52   :  { %v109_v12 = vmul.f32 %v108_v62, %v107_v18  ;;  %v150_v19 = vsel %vm148_vm4, %v149_v22, %v147_v24  ;;  %v235_v44 = vsel %vm234_vm5, %v1217_v35, %v233_v28  ;;  %v361_v40 = vmul.f32 %v909_v4, %v1264_v48  ;;  %v592_v62 = vld [vmem:[#allocation2 + $0x1d8] sm:$0xff]  ;;  %v600_v18 = vld [vmem:[#allocation2 + $0x1e8] sm:$0xff]  ;;  %v628_v28 = vld [vmem:[#allocation2 + $0x200] sm:$0xff] }
  0x53   :  { %v153_v5 = vmul.f32 %v821_v31, %v150_v19  ;;  %v238_v25 = vsel %vm236_vm6, %v237_v61, %v235_v44  ;;  %v274_v33 = vmul.f32 0.5, %v273_v41  ;;  %v521_v22 = vmul.f32 %v520_v38, %v1131_v1  ;;  %v582_v31 = vld [vmem:[#allocation2 + $0x1c0] sm:$0xff]  ;;  %v824_v24 = vld [vmem:[%s1478_s2 + $0x18] sm:$0xff] }
  0x54   :  { %v110_v37 = vadd.f32 %v109_v12, %v1180_v49  ;;  %v241_v45 = vmul.f32 %v823_v14, %v238_v25  ;;  %v281_v49 = vand.u32 2147483648, %v1253_v32  ;;  %v362_v9 = vmul.f32 %v909_v4, %v361_v40 }
  0x55   :  { %v154_v42 = vadd.f32 %v153_v5, %v1189_v27  ;;  %v275_v13 = vsub.f32 1.5, %v274_v33  ;;  %v528_v27 = vld [vmem:[#allocation2 + $0x1b0] sm:$0xff]  ;;  %v525_v35 = vmul.f32 %v524_v46, %v1142_v43  ;;  %v414_v55 = vand.u32 2147483648, %v1304_v21 }
  0x56   :  { %v363_v51 = vmul.f32 0.5, %v362_v9  ;;  %912 = vrsqrt.f32 %v1323_v47  ;;  %v242_v61 = vadd.f32 %v241_v45, %v1195_v2  ;;  %v522_v34 = vadd.f32 %v521_v22, %v518_v29  ;;  %v604_v46 = vld [vmem:[#allocation2 + $0x1f0] sm:$0xff]  ;;  %v626_v45 = vld [vmem:[#allocation2 + $0x1f8] sm:$0xff] }
  0x57   :  { %v155_v3 = vsub.f32 %v110_v37, %v154_v42  ;;  %v276_v53 = vmul.f32 %v907_v60, %v275_v13  ;;  %v911_v58 = vpop.eup %910  ;;  %v529_v15 = vmul.f32 %v528_v27, %v1154_v57  ;;  %v585_v17 = vmul.f32 %v584_v50, %v1104_v56  ;;  %v636_v13 = vld [vmem:[#allocation2 + $0x210] sm:$0xff] }
  0x58   :  { %v364_v23 = vsub.f32 1.5, %v363_v51  ;;  %v405_v60 = vmul.f32 %v911_v58, %v1304_v21  ;;  %v589_v20 = vmul.f32 %v588_v52, %v1113_v0  ;;  %vm411_vm11 = vcmp.eq.f32.partialorder %v1304_v21, inf  ;;  %v826_v51 = vld [vmem:[%s1478_s2 + $0x20] sm:$0xff] }
  0x59   :  { %188 = vmatmul.f32.vlgmr.msra.gmra.mxu0 %v155_v3  ;;  %v277_v8 = vmul.f32 %v276_v53, %v1253_v32  ;;  %v526_v39 = vadd.f32 %v525_v35, %v522_v34  ;;  %v533_v12 = vmul.f32 %v532_v59, %v1166_v10  ;;  %v593_v19 = vmul.f32 %v592_v62, %v1131_v1 }
  0x5a   :  { %v365_v2 = vmul.f32 %v909_v4, %v364_v23  ;;  %v406_v14 = vmul.f32 %v911_v58, %v405_v60  ;;  %v586_v41 = vadd.f32 %v585_v17, %v582_v31  ;;  %v597_v30 = vmul.f32 %v596_v6, %v1142_v43  ;;  %v640_v23 = vld [vmem:[#allocation2 + $0x218] sm:$0xff]  ;;  %v644_v60 = vld [vmem:[#allocation2 + $0x220] sm:$0xff] }
  0x5b   :  { %v279_v5 = vsel %vm278_vm7, %v1253_v32, %v277_v8  ;;  %v530_v37 = vadd.f32 %v529_v15, %v526_v39  ;;  %v601_v44 = vmul.f32 %v600_v18, %v1154_v57  ;;  %v629_v9 = vmul.f32 %v628_v28, %v1104_v56 }
  0x5c   :  { %v282_v4 = vsel %vm280_vm8, %v281_v49, %v279_v5  ;;  %v366_v38 = vmul.f32 %v365_v2, %v1264_v48  ;;  %v913_v40 = vpop.eup %912  ;;  %v407_v25 = vmul.f32 0.5, %v406_v14  ;;  %v590_v33 = vadd.f32 %v589_v20, %v586_v41  ;;  %v704_v2 = vld [vmem:[#allocation2 + $0x240] sm:$0xff]  ;;  %v648_v5 = vld [vmem:[#allocation2 + $0x228] sm:$0xff]  ;;  %v698_v14 = vld [vmem:[#allocation2 + $0x230] sm:$0xff] }
  0x5d   :  { %v285_v42 = vmul.f32 %v824_v24, %v282_v4  ;;  %v494_v32 = vmul.f32 %v913_v40, %v1323_v47  ;;  %v1356_v49 = vadd.f32 %v533_v12, %v530_v37  ;;  %v633_v3 = vmul.f32 %v632_v36, %v1113_v0 }
  0x5e   :  { %v368_v22 = vsel %vm367_vm9, %v1264_v48, %v366_v38  ;;  %v408_v35 = vsub.f32 1.5, %v407_v25  ;;  %v594_v50 = vadd.f32 %v593_v19, %v590_v33  ;;  %v605_v59 = vmul.f32 %v604_v46, %v1166_v10  ;;  %v708_v38 = vld [vmem:[#allocation2 + $0x248] sm:$0xff]  ;;  %v744_v33 = vld [vmem:[#allocation2 + $0x270] sm:$0xff] }
  0x5f   :  { %v286_v29 = vadd.f32 %v285_v42, %v1234_v63  ;;  %v371_v27 = vsel %vm369_vm10, %v370_v54, %v368_v22  ;;  %v495_v52 = vmul.f32 %v913_v40, %v494_v32  ;;  %v535_v53 = vand.u32 2147483647, %v1356_v49  ;;  %v716_v22 = vld [vmem:[#allocation2 + $0x258] sm:$0xff] }
  0x60   :  { %v630_v62 = vadd.f32 %v629_v9, %v626_v45  ;;  %v409_v15 = vmul.f32 %v911_v58, %v408_v35  ;;  %v598_v31 = vadd.f32 %v597_v30, %v594_v50  ;;  %v637_v63 = vmul.f32 %v636_v13, %v1131_v1  ;;  %v827_v58 = vld [vmem:[%s1478_s2 + $0x28] sm:$0xff]  ;;  %v712_v9 = vld [vmem:[#allocation2 + $0x250] sm:$0xff]  ;;  %v748_v50 = vld [vmem:[#allocation2 + $0x278] sm:$0xff] }
  0x61   :  { %v287_v34 = vsub.f32 %v242_v61, %v286_v29  ;;  %v374_v48 = vmul.f32 %v826_v51, %v371_v27  ;;  %v496_v54 = vmul.f32 0.5, %v495_v52  ;;  %v1369_v6 = vmul.f32 %v535_v53, %v1187_v11  ;;  %v700_v61 = vld [vmem:[#allocation2 + $0x238] sm:$0xff]  ;;  %v742_v29 = vld [vmem:[#allocation2 + $0x268] sm:$0xff]  ;;  %v752_v52 = vld [vmem:[#allocation2 + $0x280] sm:$0xff] }
  0x62   :  { %v634_v8 = vadd.f32 %v633_v3, %v630_v62  ;;  %v410_v17 = vmul.f32 %v409_v15, %v1304_v21  ;;  %vm413_vm12 = vcmp.eq.f32.partialorder %v1304_v21, 0.0  ;;  %v602_v20 = vadd.f32 %v601_v44, %v598_v31  ;;  %v756_v15 = vld [vmem:[#allocation2 + $0x288] sm:$0xff] }
  0x63   :  { %321 = vmatmul.f32.vlgmr.msra.gmra.mxu1 %v287_v34  ;;  %v641_v18 = vmul.f32 %v640_v23, %v1142_v43  ;;  %v497_v24 = vsub.f32 1.5, %v496_v54  ;;  %914 = vrsqrt.f32 %v1369_v6  ;;  %v645_v28 = vmul.f32 %v644_v60, %v1154_v57  ;;  %v720_v34 = vld [vmem:[#allocation2 + $0x260] sm:$0xff] }
  0x64   :  { %v412_v39 = vsel %vm411_vm11, %v1304_v21, %v410_v17  ;;  %v1381_v12 = vadd.f32 %v605_v59, %v602_v20  ;;  %v638_v19 = vadd.f32 %v637_v63, %v634_v8  ;;  %v375_v41 = vadd.f32 %v374_v48, %v1245_v7  ;;  %v760_v20 = vld [vmem:[#allocation2 + $0x290] sm:$0xff] }
  0x65   :  { %v415_v30 = vsel %vm413_vm12, %v414_v55, %v412_v39  ;;  %v498_v36 = vmul.f32 %v913_v40, %v497_v24  ;;  %v701_v4 = vmul.f32 %v700_v61, %v1104_v56  ;;  %v705_v25 = vmul.f32 %v704_v2, %v1113_v0 }
  0x66   :  { %v418_v37 = vmul.f32 %v827_v58, %v415_v30  ;;  %v607_v44 = vand.u32 2147483647, %v1381_v12  ;;  %v642_v42 = vadd.f32 %v641_v18, %v638_v19  ;;  %v649_v46 = vmul.f32 %v648_v5, %v1166_v10  ;;  %v764_v19 = vld [vmem:[#allocation2 + $0x298] sm:$0xff] }
  0x67   :  { %v702_v45 = vadd.f32 %v701_v4, %v698_v14  ;;  %v709_v40 = vmul.f32 %v708_v38, %v1131_v1  ;;  %v499_v3 = vmul.f32 %v498_v36, %v1323_v47  ;;  %v745_v27 = vmul.f32 %v744_v33, %v1104_v56 }
  0x68   :  { %v419_v7 = vadd.f32 %v418_v37, %v1273_v16  ;;  %v1393_v21 = vmul.f32 %v607_v44, %v1187_v11  ;;  %v646_v55 = vadd.f32 %v645_v28, %v642_v42  ;;  %v713_v16 = vmul.f32 %v712_v9, %v1142_v43  ;;  %v829_v28 = vld [vmem:[%s1478_s2 + $0x30] sm:$0xff] }
  0x69   :  { %v915_v32 = vpop.eup %914  ;;  %v706_v13 = vadd.f32 %v705_v25, %v702_v45  ;;  %vm500_vm13 = vcmp.eq.f32.partialorder %v1323_v47, inf  ;;  %v717_v53 = vmul.f32 %v716_v22, %v1154_v57  ;;  %v746_v56 = vadd.f32 %v745_v27, %v742_v29 }
  0x6a   :  { %v420_v51 = vsub.f32 %v375_v41, %v419_v7  ;;  %v538_v35 = vmul.f32 %v915_v32, %v1369_v6  ;;  %916 = vrsqrt.f32 %v1393_v21  ;;  %v1403_v62 = vadd.f32 %v649_v46, %v646_v55 }
  0x6b   :  { %v710_v23 = vadd.f32 %v709_v40, %v706_v13  ;;  %vm502_vm14 = vcmp.eq.f32.partialorder %v1323_v47, 0.0  ;;  %v503_v31 = vand.u32 2147483648, %v1323_v47  ;;  %v749_v63 = vmul.f32 %v748_v50, %v1113_v0 }
  0x6c   :  { %454 = vmatmul.f32.vlgmr.msra.gmra.mxu2 %v420_v51  ;;  %v539_v59 = vmul.f32 %v915_v32, %v538_v35  ;;  %v753_v48 = vmul.f32 %v752_v52, %v1131_v1  ;;  %v501_v54 = vsel %vm500_vm13, %v1323_v47, %v499_v3  ;;  %v651_v60 = vand.u32 2147483647, %v1403_v62 }
  0x6d   :  { %v714_v17 = vadd.f32 %v713_v16, %v710_v23  ;;  %v721_v18 = vmul.f32 %v720_v34, %v1166_v10  ;;  %v750_v61 = vadd.f32 %v749_v63, %v746_v56  ;;  %v757_v58 = vmul.f32 %v756_v15, %v1142_v43  ;;  %v833_v63 = vld [vmem:[%s1478_s2 + $0x48] sm:$0xff] }
  0x6e   :  { %v540_v8 = vmul.f32 0.5, %v539_v59  ;;  %v1414_v39 = vmul.f32 %v651_v60, %v1187_v11  ;;  %v504_v1 = vsel %vm502_vm14, %v503_v31, %v501_v54  ;;  %v761_v41 = vmul.f32 %v760_v20, %v1154_v57  ;;  %v830_v57 = vld [vmem:[%s1478_s2 + $0x38] sm:$0xff]  ;;  %v832_v59 = vld [vmem:[%s1478_s2 + $0x40] sm:$0xff] }
  0x6f   :  { %v718_v0 = vadd.f32 %v717_v53, %v714_v17  ;;  %v754_v14 = vadd.f32 %v753_v48, %v750_v61  ;;  %vm544_vm15 = vcmp.eq.f32.partialorder %v1369_v6, inf  ;;  %v547_v30 = vand.u32 2147483648, %v1369_v6 }
  0x70   :  { %v917_v24 = vpop.eup %916  ;;  %v541_v2 = vsub.f32 1.5, %v540_v8  ;;  %918 = vrsqrt.f32 %v1414_v39  ;;  %v765_v38 = vmul.f32 %v764_v19, %v1166_v10  ;;  %v507_v37 = vmul.f32 %v829_v28, %v504_v1 }
  0x71   :  { %v610_v5 = vmul.f32 %v917_v24, %v1393_v21  ;;  %v1426_v4 = vadd.f32 %v721_v18, %v718_v0  ;;  %v758_v47 = vadd.f32 %v757_v58, %v754_v14  ;;  %vm546_vm0 = vcmp.eq.f32.partialorder %v1369_v6, 0.0 }
  0x72   :  { %v542_v43 = vmul.f32 %v915_v32, %v541_v2  ;;  %v508_v40 = vadd.f32 %v507_v37, %v1297_v26  ;;  %vm616_vm1 = vcmp.eq.f32.partialorder %v1393_v21, inf  ;;  %v619_v35 = vand.u32 2147483648, %v1393_v21 }
  0x73   :  { %v611_v36 = vmul.f32 %v917_v24, %v610_v5  ;;  %v723_v25 = vand.u32 2147483647, %v1426_v4  ;;  %v762_v33 = vadd.f32 %v761_v41, %v758_v47  ;;  %vm618_vm2 = vcmp.eq.f32.partialorder %v1393_v21, 0.0 }
  0x74   :  { %v543_v44 = vmul.f32 %v542_v43, %v1369_v6  ;;  %vm660_vm3 = vcmp.eq.f32.partialorder %v1414_v39, inf  ;;  %vm662_vm4 = vcmp.eq.f32.partialorder %v1414_v39, 0.0 }
  0x75   :  { %v612_v42 = vmul.f32 0.5, %v611_v36  ;;  %v724_v7 = vmul.f32 %v723_v25, %v1187_v11  ;;  %v1437_v10 = vadd.f32 %v765_v38, %v762_v33 }
  0x76   :  { %v545_v46 = vsel %vm544_vm15, %v1369_v6, %v543_v44  ;;  %v919_v55 = vpop.eup %918 }
  0x77   :  { %v548_v45 = vsel %vm546_vm0, %v547_v30, %v545_v46  ;;  %v613_v9 = vsub.f32 1.5, %v612_v42  ;;  %v654_v3 = vmul.f32 %v919_v55, %v1414_v39  ;;  %920 = vrsqrt.f32 %v724_v7 }
  0x78   :  { %v551_v22 = vmul.f32 %v830_v57, %v548_v45  ;;  %v767_v6 = vand.u32 2147483647, %v1437_v10  ;;  %vm732_vm5 = vcmp.eq.f32.partialorder %v724_v7, inf  ;;  %v735_v2 = vand.u32 2147483648, %v724_v7 }
  0x79   :  { %v614_v32 = vmul.f32 %v917_v24, %v613_v9  ;;  %v655_v27 = vmul.f32 %v919_v55, %v654_v3  ;;  %vm734_vm6 = vcmp.eq.f32.partialorder %v724_v7, 0.0 }
  0x7a   :  { %v552_v13 = vadd.f32 %v551_v22, %v1356_v49  ;;  %v768_v16 = vmul.f32 %v767_v6, %v1187_v11  ;;  %v663_v11 = vand.u32 2147483648, %v1414_v39 }
  0x7b   :  { %v615_v29 = vmul.f32 %v614_v32, %v1393_v21  ;;  %v656_v50 = vmul.f32 0.5, %v655_v27 }
  0x7c   :  { %v553_v51 = vsub.f32 %v508_v40, %v552_v13  ;;  %922 = vrsqrt.f32 %v768_v16  ;;  %vm776_vm7 = vcmp.eq.f32.partialorder %v768_v16, inf  ;;  %v779_v41 = vand.u32 2147483648, %v768_v16 }
  0x7d   :  { %v617_v26 = vsel %vm616_vm1, %v1393_v21, %v615_v29  ;;  %v921_v49 = vpop.eup %920  ;;  %v657_v52 = vsub.f32 1.5, %v656_v50  ;;  %vm778_vm8 = vcmp.eq.f32.partialorder %v768_v16, 0.0 }
  0x7e   :  { %570 = vmatmul.f32.vlgmr.msra.gmra.mxu3 %v553_v51  ;;  %v620_v53 = vsel %vm618_vm2, %v619_v35, %v617_v26  ;;  %v726_v23 = vmul.f32 %v921_v49, %v724_v7 }
  0x7f   :  { %v658_v34 = vmul.f32 %v919_v55, %v657_v52  ;;  %v623_v15 = vmul.f32 %v832_v59, %v620_v53 }
  0x80   :  { %v727_v56 = vmul.f32 %v921_v49, %v726_v23 }
  0x81   :  { %v659_v21 = vmul.f32 %v658_v34, %v1414_v39  ;;  %v624_v20 = vadd.f32 %v623_v15, %v1381_v12 }
  0x82   :  { %v923_v31 = vpop.eup %922  ;;  %v728_v48 = vmul.f32 0.5, %v727_v56 }
  0x83   :  { %v661_v54 = vsel %vm660_vm3, %v1414_v39, %v659_v21  ;;  %v770_v8 = vmul.f32 %v923_v31, %v768_v16  ;;  %v835_v39 = vld [vmem:[%s1478_s2 + $0x50] sm:$0xff] }
  0x84   :  { %v664_v60 = vsel %vm662_vm4, %v663_v11, %v661_v54  ;;  %v729_v17 = vsub.f32 1.5, %v728_v48 }
  0x85   :  { %v667_v18 = vmul.f32 %v833_v63, %v664_v60  ;;  %v771_v61 = vmul.f32 %v923_v31, %v770_v8 }
  0x86   :  { %v730_v58 = vmul.f32 %v921_v49, %v729_v17 }
  0x87   :  { %v668_v24 = vadd.f32 %v667_v18, %v1403_v62  ;;  %v772_v0 = vmul.f32 0.5, %v771_v61  ;;  %v836_v62 = vld [vmem:[%s1478_s2 + $0x58] sm:$0xff] }
  0x88   :  { %v731_v19 = vmul.f32 %v730_v58, %v724_v7 }
  0x89   :  { %v669_v1 = vsub.f32 %v624_v20, %v668_v24  ;;  %v773_v28 = vsub.f32 1.5, %v772_v0 }
  0x8a   :  { %v733_v5 = vsel %vm732_vm5, %v724_v7, %v731_v19 }
  0x8b   :  { %686 = vmatmul.f32.vlgmr.msrb.gmra.mxu0 %v669_v1  ;;  %v736_v14 = vsel %vm734_vm6, %v735_v2, %v733_v5  ;;  %v774_v12 = vmul.f32 %v923_v31, %v773_v28  ;;  %v68_v1 = vld [vmem:[%s1480_s4] sm:$0xff] }
  0x8c   :  { %v739_v43 = vmul.f32 %v835_v39, %v736_v14 }
  0x8d   :  { %v775_v30 = vmul.f32 %v774_v12, %v768_v16 }
  0x8e   :  { %v740_v38 = vadd.f32 %v739_v43, %v1426_v4 }
  0x8f   :  { %v777_v36 = vsel %vm776_vm7, %v768_v16, %v775_v30 }
  0x90   :  { %v780_v47 = vsel %vm778_vm8, %v779_v41, %v777_v36 }
  0x91   :  { %v783_v37 = vmul.f32 %v836_v62, %v780_v47 }
  0x93   :  { %v784_v44 = vadd.f32 %v783_v37, %v1437_v10 }
  0x95   :  { %v785_v57 = vsub.f32 %v740_v38, %v784_v44 }
  0x97   :  { %802 = vmatmul.f32.vlgmr.msrb.gmra.mxu1 %v785_v57 }
  0xd6   :  { %v189_v42 = vpop.f32.mrf.mxu0 }
  0xd7   :  { %v848_v25 = vcvt.f32.s32 %v189_v42  ;;  %v851_v40 = vand.u32 2147483648, %v189_v42  ;;  %v846_v3 = vand.u32 2147483647, %v189_v42 }
  0xd9   :  { %v849_v45 = vcvt.s32.f32 %v848_v25  ;;  %vm847_vm9 = vcmp.lt.f32.partialorder %v846_v3, 8388608.0 }
  0xdb   :  { %v850_v55 = vand.u32 2147483647, %v849_v45 }
  0xdd   :  { %v852_v13 = vor.u32 %v851_v40, %v850_v55 }
  0xdf   :  { %v853_v35 = vsel %vm847_vm9, %v852_v13, %v189_v42 }
  0xe0   :  { %v322_v33 = vpop.f32.mrf.mxu1  ;;  %v822_v53 = vclamps-f32 %v853_v35, 2048.0 }
  0xe1   :  { %v856_v9 = vcvt.f32.s32 %v322_v33  ;;  %v859_v4 = vand.u32 2147483648, %v322_v33  ;;  %v854_v10 = vand.u32 2147483647, %v322_v33 }
  0xe2   :  { %v195_v56 = vrot.slane %v822_v53, 4 }
  0xe3   :  { %v857_v22 = vcvt.s32.f32 %v856_v9  ;;  %vm855_vm10 = vcmp.lt.f32.partialorder %v854_v10, 8388608.0 }
  0xe4   :  { %v196_v60 = vadd.f32 %v822_v53, %v195_v56 }
  0xe5   :  { %v858_v6 = vand.u32 2147483647, %v857_v22 }
  0xe6   :  { %v197_v0 = vmul.f32 0.000390625, %v196_v60 }
  0xe7   :  { %v860_v49 = vor.u32 %v859_v4, %v858_v6 }
  0xe8   :  { %v198_v14 = vadd.f32 %v197_v0, %v68_v1 }
  0xe9   :  { %v861_v23 = vsel %vm855_vm10, %v860_v49, %v322_v33 }
  0xea   :  { %v825_v48 = vclamps-f32 %v861_v23, 2048.0 }
  0xec   :  { %v328_v58 = vrot.slane %v825_v48, 4 }
  0xee   :  { %v329_v5 = vadd.f32 %v825_v48, %v328_v58 }
  0xef   :  { %v455_v46 = vpop.f32.mrf.mxu2 }
  0xf0   :  { %v864_v7 = vcvt.f32.s32 %v455_v46  ;;  %v867_v16 = vand.u32 2147483648, %v455_v46  ;;  %v862_v26 = vand.u32 2147483647, %v455_v46  ;;  %v330_v62 = vmul.f32 0.000390625, %v329_v5 }
  0xf2   :  { %v865_v32 = vcvt.s32.f32 %v864_v7  ;;  %vm863_vm11 = vcmp.lt.f32.partialorder %v862_v26, 8388608.0  ;;  %v331_v44 = vadd.f32 %v330_v62, %v198_v14 }
  0xf4   :  { %v866_v29 = vand.u32 2147483647, %v865_v32 }
  0xf6   :  { %v868_v52 = vor.u32 %v867_v16, %v866_v29 }
  0xf8   :  { %v869_v34 = vsel %vm863_vm11, %v868_v52, %v455_v46 }
  0xf9   :  { %v828_v54 = vclamps-f32 %v869_v34, 2048.0 }
  0xfb   :  { %v461_v24 = vrot.slane %v828_v54, 4 }
  0xfd   :  { %v462_v39 = vadd.f32 %v828_v54, %v461_v24 }
  0xff   :  { %v463_v36 = vmul.f32 0.000390625, %v462_v39 }
 0x101   :  { %v571_v27 = vpop.f32.mrf.mxu3  ;;  %v464_v33 = vadd.f32 %v463_v36, %v331_v44 }
 0x102   :  { %v872_v51 = vcvt.f32.s32 %v571_v27  ;;  %v875_v11 = vand.u32 2147483648, %v571_v27  ;;  %v870_v15 = vand.u32 2147483647, %v571_v27 }
 0x104   :  { %v873_v50 = vcvt.s32.f32 %v872_v51  ;;  %vm871_vm12 = vcmp.lt.f32.partialorder %v870_v15, 8388608.0 }
 0x106   :  { %v874_v59 = vand.u32 2147483647, %v873_v50 }
 0x108   :  { %v687_v21 = vpop.f32.mrf.mxu0  ;;  %v876_v31 = vor.u32 %v875_v11, %v874_v59 }
 0x109   :  { %v880_v63 = vcvt.f32.s32 %v687_v21  ;;  %v878_v17 = vand.u32 2147483647, %v687_v21  ;;  %v883_v61 = vand.u32 2147483648, %v687_v21 }
 0x10a   :  { %v877_v20 = vsel %vm871_vm12, %v876_v31, %v571_v27 }
 0x10b   :  { %v881_v8 = vcvt.s32.f32 %v880_v63  ;;  %v831_v19 = vclamps-f32 %v877_v20, 2048.0  ;;  %vm879_vm13 = vcmp.lt.f32.partialorder %v878_v17, 8388608.0 }
 0x10d   :  { %v882_v18 = vand.u32 2147483647, %v881_v8  ;;  %v577_v12 = vrot.slane %v831_v19, 4 }
 0x10f   :  { %v884_v2 = vor.u32 %v883_v61, %v882_v18  ;;  %v578_v57 = vadd.f32 %v831_v19, %v577_v12 }
 0x111   :  { %v885_v28 = vsel %vm879_vm13, %v884_v2, %v687_v21  ;;  %v579_v45 = vmul.f32 0.0001953125, %v578_v57 }
 0x112   :  { %v834_v41 = vclamps-f32 %v885_v28, 2048.0 }
 0x113   :  { %v580_v55 = vadd.f32 %v579_v45, %v464_v33 }
 0x114   :  { %v803_v43 = vpop.f32.mrf.mxu1  ;;  %v693_v42 = vrot.slane %v834_v41, 4 }
 0x115   :  { %v888_v30 = vcvt.f32.s32 %v803_v43  ;;  %v886_v47 = vand.u32 2147483647, %v803_v43  ;;  %v891_v37 = vand.u32 2147483648, %v803_v43 }
 0x116   :  { %v694_v9 = vadd.f32 %v834_v41, %v693_v42 }
 0x117   :  { %v889_v38 = vcvt.s32.f32 %v888_v30  ;;  %vm887_vm14 = vcmp.lt.f32.partialorder %v886_v47, 8388608.0 }
 0x118   :  { %v695_v22 = vmul.f32 0.0001953125, %v694_v9 }
 0x119   :  { %v890_v25 = vand.u32 2147483647, %v889_v38 }
 0x11a   :  { %v696_v3 = vadd.f32 %v695_v22, %v580_v55 }
 0x11b   :  { %v892_v46 = vor.u32 %v891_v37, %v890_v25 }
 0x11d   :  { %v893_v7 = vsel %vm887_vm14, %v892_v46, %v803_v43 }
 0x11e   :  { %v837_v40 = vclamps-f32 %v893_v7, 2048.0 }
 0x120   :  { %v809_v32 = vrot.slane %v837_v40, 4 }
 0x122   :  { %v810_v13 = vadd.f32 %v837_v40, %v809_v32 }
 0x124   :  { %v811_v6 = vmul.f32 0.0001953125, %v810_v13 }
 0x126   :  { %v812_v4 = vadd.f32 %v811_v6, %v696_v3 }
 0x128   :  { %813 = vst [vmem:[%s1481_s5] sm:$0xff] %v812_v4 }
 0x129   :  { %818 = vsyncpa [#allocation3], 1 }
 0x12a   :  { %819 = vsyncpa [#allocation5], 1 }

</bundles_post_ra>
